<compile_context>
chip_gen: v5e
topology: v5e:2x2
jax: 0.10.0
libtpu: 0.0.40
codegen_flags: <defaults>
</compile_context>

<pallas_src>
import jax
import jax.numpy as jnp
from jax import lax
from jax.experimental import pallas as pl
from jax.experimental.pallas import tpu as pltpu

NUM_GROUPS = 4        # GQA.no_of_q_heads = no_of_heads // mqa_heads
HEADS_PER_GROUP = 2   # MQA.no_of_kv_heads (query projections per group)
EPS = 1.1920929e-07   # torch.nn.RMSNorm default eps = finfo(float32).eps


def _matT(a, b):
    # a @ b.T, contracting last axes, f32 accumulation on the MXU.
    return lax.dot_general(a, b, (((1,), (1,)), ((), ())),
                           preferred_element_type=jnp.float32)


def _rmsnorm(x, g):
    ms = jnp.mean(x * x, axis=-1, keepdims=True)
    return x * lax.rsqrt(ms + EPS) * g


def _rope(x, cos, sin_plus, sin_minus):
    # Interleaved-pair RoPE on a head-packed (S, D) slab:
    #   out[2j]   = x[2j]*cos_j - x[2j+1]*sin_j
    #   out[2j+1] = x[2j+1]*cos_j + x[2j]*sin_j
    # sin_minus = -sin on even lanes / 0 on odd; sin_plus = sin on odd / 0 on
    # even.  The two static rolls lower to lane slice+concat; the zeroed lanes
    # kill every wrap-around / cross-head contribution (requires hs even —
    # asserted wrapper-side), so the packed-slab formulation is exact.
    x_next = jnp.roll(x, -1, axis=-1)   # x_next[i] = x[i+1]
    x_prev = jnp.roll(x, 1, axis=-1)    # x_prev[i] = x[i-1]
    return x * cos + x_next * sin_minus + x_prev * sin_plus


def decoder_layer_kernel(x_ref, g1_ref, g2_ref, cos_ref, sinp_ref, sinm_ref,
                         wq_ref, wk_ref, wv_ref, wc_ref, w1_ref, w2_ref, w3_ref,
                         out_ref):
    x = x_ref[0]                                   # (S, E) f32
    S, E = x.shape
    Dk = wk_ref.shape[0]                           # G * hs
    Dq = wq_ref.shape[0]                           # G * H * hs
    hs = Dk // NUM_GROUPS
    G, H = NUM_GROUPS, HEADS_PER_GROUP

    # ---------------- attention branch ----------------
    h1 = _rmsnorm(x, g1_ref[...])
    h1b = h1.astype(jnp.bfloat16)

    # Packed projections (all groups/heads at once, lane-dense).  1/sqrt(hs)
    # is already folded into wq.
    q = _matT(h1b, wq_ref[...])                    # (S, Dq) f32
    k = _matT(h1b, wk_ref[...])                    # (S, Dk) f32
    v = _matT(h1b, wv_ref[...])                    # (S, Dk) f32

    # Tile the de-duplicated (S, hs) bf16 RoPE tables across the packed head
    # lane axis (lane concat of identical blocks; cheap, saves 16x table DMA).
    cos_h = cos_ref[...].astype(jnp.float32)
    sp_h = sinp_ref[...].astype(jnp.float32)
    sm_h = sinm_ref[...].astype(jnp.float32)
    cos_q = jnp.concatenate([cos_h] * (G * H), axis=-1)   # (S, Dq)
    sp_q = jnp.concatenate([sp_h] * (G * H), axis=-1)
    sm_q = jnp.concatenate([sm_h] * (G * H), axis=-1)

    q_rot = _rope(q, cos_q, sp_q, sm_q)
    k_rot = _rope(k, cos_q[:, :Dk], sp_q[:, :Dk], sm_q[:, :Dk])

    # Whole-slab bf16 casts, hoisted out of the head loops.
    q_b = q_rot.astype(jnp.bfloat16)
    k_b = k_rot.astype(jnp.bfloat16)
    v_b = v.astype(jnp.bfloat16)

    # Additive causal bias, built once; tiled over the H sublane-stacked heads.
    row = lax.broadcasted_iota(jnp.int32, (S, S), 0)
    col = lax.broadcasted_iota(jnp.int32, (S, S), 1)
    bias = jnp.where(row >= col, 0.0, -1e30).astype(jnp.float32)   # (S, S)
    bias_h = jnp.concatenate([bias] * H, axis=0)                   # (H*S, S)

    head_outs = []
    for g in range(G):                                 # static unroll
        kg = k_b[:, g * hs:(g + 1) * hs]               # (S, hs) bf16
        vg = v_b[:, g * hs:(g + 1) * hs]               # (S, hs) bf16
        base = g * H * hs
        # Stack this group's H query heads along sublanes -> one QK^T and one
        # P@V MXU issue per group instead of per head.
        q_stack = jnp.concatenate(
            [q_b[:, base + h * hs: base + (h + 1) * hs] for h in range(H)],
            axis=0)                                    # (H*S, hs) bf16
        sc = _matT(q_stack, kg) + bias_h               # (H*S, S) f32
        sc = sc - jnp.max(sc, axis=-1, keepdims=True)
        e = jnp.exp(sc)                                # f32 (exact on v5e too)
        p = e / jnp.sum(e, axis=-1, keepdims=True)     # exact softmax denom
        attn = jnp.dot(p.astype(jnp.bfloat16), vg,
                       preferred_element_type=jnp.float32)   # (H*S, hs) f32
        head_outs.extend(attn[h * S:(h + 1) * S] for h in range(H))

    # Lane-pack every head's output and apply the folded output projection
    # W_comb = Wf_g @ Wo_{g,h} in ONE matmul (contraction depth Dq, not hs).
    attn_all = jnp.concatenate(head_outs, axis=-1).astype(jnp.bfloat16)  # (S, Dq)
    attn_out = _matT(attn_all, wc_ref[...])                              # (S, E) f32

    x1 = x + attn_out                                  # residual 1 (f32)
    # TODO(synk): attn / residual / FFN nn.Dropout are identity in eval mode.

    # ---------------- SwiGLU FFN branch (Hd zero-padded, lane-dense) --------
    h2 = _rmsnorm(x1, g2_ref[...])
    h2b = h2.astype(jnp.bfloat16)
    a = _matT(h2b, w1_ref[...])                        # (S, Hd_pad) f32
    gate = _matT(h2b, w2_ref[...])                     # (S, Hd_pad) f32
    swish = a * (1.0 / (1.0 + jnp.exp(-a)))
    ffn = _matT((swish * gate).astype(jnp.bfloat16), w3_ref[...])   # (S, E) f32

    out_ref[0] = (x1 + ffn).astype(out_ref.dtype)


def prepare_decoder_inputs(params, S):
    """One-time weight folding / packing / RoPE-table build (kept off the
    per-step critical path; call once and reuse the result)."""
    G, H = NUM_GROUPS, HEADS_PER_GROUP
    E = params["wf"].shape[0]
    hs = E // G
    assert hs % 2 == 0, "RoPE pair swap requires an even head size"
    Dq, Dk = G * H * hs, G * hs
    Hd = params["w1"].shape[0]
    Hd_pad = ((Hd + 127) // 128) * 128                 # lane-dense FFN hidden
    scale = float(hs) ** -0.5
    wdt = jnp.bfloat16

    wq = (params["wq"].reshape(Dq, E) * scale).astype(wdt)   # scale folded in
    wk = params["wk"].reshape(Dk, E).astype(wdt)
    wv = params["wv"].reshape(Dk, E).astype(wdt)
    # Fold the final GQA linear into each MQA output projection:
    #   W_comb[:, (g*H+h)*hs + d] = (Wf[:, g*E:(g+1)*E] @ Wo_g[:, h*hs:(h+1)*hs])[:, d]
    wf_r = params["wf"].reshape(E, G, E)
    wc = jnp.einsum("oge,gec->ogc", wf_r, params["wo"]).reshape(E, Dq).astype(wdt)
    # Zero-padded FFN weights (exact: padded rows of w1/w2 give a==gate==0).
    w1 = jnp.pad(params["w1"], ((0, Hd_pad - Hd), (0, 0))).astype(wdt)
    w2 = jnp.pad(params["w2"], ((0, Hd_pad - Hd), (0, 0))).astype(wdt)
    w3 = jnp.pad(params["w3"], ((0, 0), (0, Hd_pad - Hd))).astype(wdt)
    g1 = params["g1"].reshape(1, E).astype(jnp.float32)
    g2 = params["g2"].reshape(1, E).astype(jnp.float32)

    # De-duplicated per-head RoPE tables, (S, hs), bf16 (tiled in-kernel).
    half = jnp.arange(0, hs, 2, dtype=jnp.float32)
    theta = 10000.0 ** (-2.0 * half / hs)
    ang = jnp.arange(S, dtype=jnp.float32)[:, None] * theta[None, :]
    cos_h = jnp.repeat(jnp.cos(ang), 2, axis=-1)               # (S, hs)
    sin_h = jnp.repeat(jnp.sin(ang), 2, axis=-1)
    odd = (jnp.arange(hs) % 2 == 1)[None, :]
    sinp_h = jnp.where(odd, sin_h, 0.0)                        # pairs with x[i-1]
    sinm_h = jnp.where(odd, 0.0, -sin_h)                       # pairs with x[i+1]

    return dict(g1=g1, g2=g2,
                cos=cos_h.astype(jnp.bfloat16),
                sinp=sinp_h.astype(jnp.bfloat16),
                sinm=sinm_h.astype(jnp.bfloat16),
                wq=wq, wk=wk, wv=wv, wc=wc, w1=w1, w2=w2, w3=w3)


def decoder_layer_forward(x, prep):
    """x: (B, S, E) f32. `prep` comes from prepare_decoder_inputs()."""
    B, S, E = x.shape
    Dq = prep["wq"].shape[0]
    Dk = prep["wk"].shape[0]
    hs = Dk // NUM_GROUPS
    Hd_pad = prep["w1"].shape[0]

    def rep(shape):   # grid-invariant (replicated) operand
        # TODO(synk): add pipeline_mode=pl.Buffered(1) here once single-
        #             buffering of constant operands is needed for v7x VMEM.
        return pl.BlockSpec(shape, lambda b: (0,) * len(shape))

    grid_spec = pltpu.PrefetchScalarGridSpec(
        num_scalar_prefetch=0,
        grid=(B,),
        in_specs=[
            pl.BlockSpec((1, S, E), lambda b: (b, 0, 0)),   # x
            rep((1, E)),            # rmsnorm1 weight
            rep((1, E)),            # rmsnorm2 weight
            rep((S, hs)),           # cos base table (bf16)
            rep((S, hs)),           # sin_plus base table
            rep((S, hs)),           # sin_minus base table
            rep((Dq, E)),           # Wq (packed, pre-scaled, bf16)
            rep((Dk, E)),           # Wk (packed)
            rep((Dk, E)),           # Wv (packed)
            rep((E, Dq)),           # W_comb = Wf @ Wo (folded)
            rep((Hd_pad, E)),       # FFN W1 (zero-padded)
            rep((Hd_pad, E)),       # FFN W2 (zero-padded)
            rep((E, Hd_pad)),       # FFN W3 (zero-padded)
        ],
        out_specs=pl.BlockSpec((1, S, E), lambda b: (b, 0, 0)),
    )

    return pl.pallas_call(
        decoder_layer_kernel,
        out_shape=jax.ShapeDtypeStruct((B, S, E), jnp.float32),
        grid_spec=grid_spec,
        compiler_params=pltpu.CompilerParams(
            dimension_semantics=("parallel",),
            vmem_limit_bytes=48 * 1024 * 1024),   # headroom on v7x's 64 MiB
    )(x, prep["g1"], prep["g2"], prep["cos"], prep["sinp"], prep["sinm"],
      prep["wq"], prep["wk"], prep["wv"], prep["wc"],
      prep["w1"], prep["w2"], prep["w3"])


# ---------------- pure-JAX reference (mirrors the PyTorch module, f32) -------
def _rope_ref(x):
    B, S, D = x.shape
    pos = jnp.arange(0, D, 2, dtype=jnp.float32)
    theta = 10000.0 ** (-2.0 * pos / D)
    ang = jnp.arange(S, dtype=jnp.float32)[:, None] * theta[None, :]
    c, s = jnp.cos(ang), jnp.sin(ang)
    xr = x.reshape(B, S, D // 2, 2)
    out = jnp.stack([xr[..., 0] * c - xr[..., 1] * s,
                     xr[..., 1] * c + xr[..., 0] * s], axis=-1)
    return out.reshape(B, S, D)


def _rmsnorm_ref(x, w):
    return x * lax.rsqrt(jnp.mean(x * x, axis=-1, keepdims=True) + EPS) * w


def decoder_layer_reference(x, params):
    B, S, E = x.shape
    G, H = NUM_GROUPS, HEADS_PER_GROUP
    hs = E // G
    scale = float(hs) ** -0.5
    mask = jnp.tril(jnp.ones((S, S), bool))

    h = _rmsnorm_ref(x, params["g1"])
    group_outs = []
    for g in range(G):
        k = h @ params["wk"][g].T
        v = h @ params["wv"][g].T
        k_rot = _rope_ref(k)
        heads = []
        for q_i in range(H):
            q = _rope_ref(h @ params["wq"][g, q_i].T)
            w = (q @ jnp.swapaxes(k_rot, -2, -1)) * scale
            w = jnp.where(mask, w, -jnp.inf)
            p = jax.nn.softmax(w, axis=-1)
            heads.append(p @ v)
        group_outs.append(jnp.concatenate(heads, -1) @ params["wo"][g].T)
    x = x + jnp.concatenate(group_outs, -1) @ params["wf"].T

    h2 = _rmsnorm_ref(x, params["g2"])
    a = h2 @ params["w1"].T
    swish = a * jax.nn.sigmoid(a)
    gate = h2 @ params["w2"].T
    return x + (swish * gate) @ params["w3"].T


# ---------------------------------------------------------------------------
if __name__ == "__main__":
    # Scaled-down ModelArgs (block_size=128, embeddings_dims=512 in the module).
    B, S, E = 2, 16, 128
    G, H = NUM_GROUPS, HEADS_PER_GROUP
    hs = E // G                              # head_size
    Hd = int(2 * (4 * E) / 3)                # SWiGLU hidden dim (341)

    key = jax.random.PRNGKey(0)
    ks = jax.random.split(key, 9)
    params = {
        "wq": 0.02 * jax.random.normal(ks[0], (G, H, hs, E), jnp.float32),
        "wk": 0.02 * jax.random.normal(ks[1], (G, hs, E), jnp.float32),
        "wv": 0.02 * jax.random.normal(ks[2], (G, hs, E), jnp.float32),
        "wo": 0.02 * jax.random.normal(ks[3], (G, E, H * hs), jnp.float32),
        "wf": 0.02 * jax.random.normal(ks[4], (E, G * E), jnp.float32),
        "w1": 0.02 * jax.random.normal(ks[5], (Hd, E), jnp.float32),
        "w2": 0.02 * jax.random.normal(ks[6], (Hd, E), jnp.float32),
        "w3": 0.02 * jax.random.normal(ks[7], (E, Hd), jnp.float32),
        "g1": jnp.ones((E,), jnp.float32),   # nn.RMSNorm weight init
        "g2": jnp.ones((E,), jnp.float32),
    }
    x = jax.random.normal(ks[8], (B, S, E), jnp.float32)

    prep = prepare_decoder_inputs(params, S)      # one-time weight/table prep
    out = jax.block_until_ready(decoder_layer_forward(x, prep))
    ref = jax.block_until_ready(decoder_layer_reference(x, params))
    assert out.shape == (B, S, E)
    err = float(jnp.max(jnp.abs(out - ref)))
    # bf16 MXU operands / bf16 RoPE tables -> loosened tolerance.
    assert err < 2e-2, f"max abs err {err}"
    print("KERNEL_OK")
</pallas_src>

<mosaic_0001>
module attributes {stable_mosaic.version = 11 : i64} {
  func.func @decoder_layer_kernel(%arg0: i32, %arg1: memref<1x16x128xf32, #tpu.memory_space<vmem>>, %arg2: memref<1x128xf32, #tpu.memory_space<vmem>>, %arg3: memref<1x128xf32, #tpu.memory_space<vmem>>, %arg4: memref<16x32xbf16, #tpu.memory_space<vmem>>, %arg5: memref<16x32xbf16, #tpu.memory_space<vmem>>, %arg6: memref<16x32xbf16, #tpu.memory_space<vmem>>, %arg7: memref<256x128xbf16, #tpu.memory_space<vmem>>, %arg8: memref<128x128xbf16, #tpu.memory_space<vmem>>, %arg9: memref<128x128xbf16, #tpu.memory_space<vmem>>, %arg10: memref<128x256xbf16, #tpu.memory_space<vmem>>, %arg11: memref<384x128xbf16, #tpu.memory_space<vmem>>, %arg12: memref<384x128xbf16, #tpu.memory_space<vmem>>, %arg13: memref<128x384xbf16, #tpu.memory_space<vmem>>, %arg14: memref<1x16x128xf32, #tpu.memory_space<vmem>>) attributes {dimension_semantics = [#tpu.dimension_semantics<parallel>], iteration_bounds = array<i64: 2>, scalar_prefetch = 0 : i64, scratch_operands = 0 : i64, tpu.core_type = #tpu.core_type<tc>, window_params = [{transform_indices = @transform_0, window_bounds = array<i64: 1, 16, 128>}, {pipeline_mode = #tpu.pipeline_mode<synchronous>, transform_indices = @transform_1, window_bounds = array<i64: 1, 128>}, {pipeline_mode = #tpu.pipeline_mode<synchronous>, transform_indices = @transform_2, window_bounds = array<i64: 1, 128>}, {pipeline_mode = #tpu.pipeline_mode<synchronous>, transform_indices = @transform_3, window_bounds = array<i64: 16, 32>}, {pipeline_mode = #tpu.pipeline_mode<synchronous>, transform_indices = @transform_4, window_bounds = array<i64: 16, 32>}, {pipeline_mode = #tpu.pipeline_mode<synchronous>, transform_indices = @transform_5, window_bounds = array<i64: 16, 32>}, {pipeline_mode = #tpu.pipeline_mode<synchronous>, transform_indices = @transform_6, window_bounds = array<i64: 256, 128>}, {pipeline_mode = #tpu.pipeline_mode<synchronous>, transform_indices = @transform_7, window_bounds = array<i64: 128, 128>}, {pipeline_mode = #tpu.pipeline_mode<synchronous>, transform_indices = @transform_8, window_bounds = array<i64: 128, 128>}, {pipeline_mode = #tpu.pipeline_mode<synchronous>, transform_indices = @transform_9, window_bounds = array<i64: 128, 256>}, {pipeline_mode = #tpu.pipeline_mode<synchronous>, transform_indices = @transform_10, window_bounds = array<i64: 384, 128>}, {pipeline_mode = #tpu.pipeline_mode<synchronous>, transform_indices = @transform_11, window_bounds = array<i64: 384, 128>}, {pipeline_mode = #tpu.pipeline_mode<synchronous>, transform_indices = @transform_12, window_bounds = array<i64: 128, 384>}, {transform_indices = @transform_13, window_bounds = array<i64: 1, 16, 128>}]} {
    %c0 = arith.constant 0 : index
    %c0_0 = arith.constant 0 : index
    %c0_1 = arith.constant 0 : index
    %0 = vector.load %arg1[%c0, %c0_0, %c0_1] : memref<1x16x128xf32, #tpu.memory_space<vmem>>, vector<1x16x128xf32>
    %1 = vector.shape_cast %0 : vector<1x16x128xf32> to vector<16x128xf32>
    %c0_2 = arith.constant 0 : index
    %c0_3 = arith.constant 0 : index
    %2 = vector.load %arg2[%c0_2, %c0_3] : memref<1x128xf32, #tpu.memory_space<vmem>>, vector<1x128xf32>
    %3 = arith.mulf %1, %1 : vector<16x128xf32>
    %cst = arith.constant dense<0.000000e+00> : vector<16xf32>
    %4 = vector.multi_reduction <add>, %3, %cst [1] : vector<16x128xf32> to vector<16xf32>
    %5 = vector.shape_cast %4 : vector<16xf32> to vector<16x1xf32>
    %cst_4 = arith.constant 1.280000e+02 : f32
    %6 = vector.broadcast %cst_4 : f32 to vector<16x1xf32>
    %7 = arith.divf %5, %6 : vector<16x1xf32>
    %cst_5 = arith.constant 1.1920929E-7 : f32
    %8 = vector.broadcast %cst_5 : f32 to vector<16x1xf32>
    %9 = arith.addf %7, %8 : vector<16x1xf32>
    %10 = math.rsqrt %9 : vector<16x1xf32>
    %11 = vector.broadcast %10 : vector<16x1xf32> to vector<16x128xf32>
    %12 = arith.mulf %1, %11 : vector<16x128xf32>
    %13 = vector.broadcast %2 : vector<1x128xf32> to vector<16x128xf32>
    %14 = arith.mulf %12, %13 : vector<16x128xf32>
    %15 = arith.truncf %14 : vector<16x128xf32> to vector<16x128xbf16>
    %c0_6 = arith.constant 0 : index
    %c0_7 = arith.constant 0 : index
    %16 = vector.load %arg7[%c0_6, %c0_7] : memref<256x128xbf16, #tpu.memory_space<vmem>>, vector<256x128xbf16>
    %cst_8 = arith.constant dense<0.000000e+00> : vector<16x256xf32>
    %17 = tpu.matmul %15, %16, %cst_8 {dimension_numbers = #tpu.dot_dimension_numbers<[1], [1], [0], [0], [0, 0, 1, 0], [], []>} : vector<16x128xbf16>, vector<256x128xbf16>, vector<16x256xf32> -> vector<16x256xf32>
    %c0_9 = arith.constant 0 : index
    %c0_10 = arith.constant 0 : index
    %18 = vector.load %arg8[%c0_9, %c0_10] : memref<128x128xbf16, #tpu.memory_space<vmem>>, vector<128x128xbf16>
    %cst_11 = arith.constant dense<0.000000e+00> : vector<16x128xf32>
    %19 = tpu.matmul %15, %18, %cst_11 {dimension_numbers = #tpu.dot_dimension_numbers<[1], [1], [0], [0], [0, 0, 1, 0], [], []>} : vector<16x128xbf16>, vector<128x128xbf16>, vector<16x128xf32> -> vector<16x128xf32>
    %c0_12 = arith.constant 0 : index
    %c0_13 = arith.constant 0 : index
    %20 = vector.load %arg9[%c0_12, %c0_13] : memref<128x128xbf16, #tpu.memory_space<vmem>>, vector<128x128xbf16>
    %cst_14 = arith.constant dense<0.000000e+00> : vector<16x128xf32>
    %21 = tpu.matmul %15, %20, %cst_14 {dimension_numbers = #tpu.dot_dimension_numbers<[1], [1], [0], [0], [0, 0, 1, 0], [], []>} : vector<16x128xbf16>, vector<128x128xbf16>, vector<16x128xf32> -> vector<16x128xf32>
    %c0_15 = arith.constant 0 : index
    %c0_16 = arith.constant 0 : index
    %22 = vector.load %arg4[%c0_15, %c0_16] : memref<16x32xbf16, #tpu.memory_space<vmem>>, vector<16x32xbf16>
    %23 = arith.extf %22 : vector<16x32xbf16> to vector<16x32xf32>
    %c0_17 = arith.constant 0 : index
    %c0_18 = arith.constant 0 : index
    %24 = vector.load %arg5[%c0_17, %c0_18] : memref<16x32xbf16, #tpu.memory_space<vmem>>, vector<16x32xbf16>
    %25 = arith.extf %24 : vector<16x32xbf16> to vector<16x32xf32>
    %c0_19 = arith.constant 0 : index
    %c0_20 = arith.constant 0 : index
    %26 = vector.load %arg6[%c0_19, %c0_20] : memref<16x32xbf16, #tpu.memory_space<vmem>>, vector<16x32xbf16>
    %27 = arith.extf %26 : vector<16x32xbf16> to vector<16x32xf32>
    %28 = tpu.concatenate %23, %23, %23, %23, %23, %23, %23, %23 in 1 : vector<16x32xf32>, vector<16x32xf32>, vector<16x32xf32>, vector<16x32xf32>, vector<16x32xf32>, vector<16x32xf32>, vector<16x32xf32>, vector<16x32xf32> -> vector<16x256xf32>
    %29 = tpu.concatenate %25, %25, %25, %25, %25, %25, %25, %25 in 1 : vector<16x32xf32>, vector<16x32xf32>, vector<16x32xf32>, vector<16x32xf32>, vector<16x32xf32>, vector<16x32xf32>, vector<16x32xf32>, vector<16x32xf32> -> vector<16x256xf32>
    %30 = tpu.concatenate %27, %27, %27, %27, %27, %27, %27, %27 in 1 : vector<16x32xf32>, vector<16x32xf32>, vector<16x32xf32>, vector<16x32xf32>, vector<16x32xf32>, vector<16x32xf32>, vector<16x32xf32>, vector<16x32xf32> -> vector<16x256xf32>
    %31 = vector.extract_strided_slice %17 {offsets = [0, 1], sizes = [16, 255], strides = [1, 1]} : vector<16x256xf32> to vector<16x255xf32>
    %32 = vector.extract_strided_slice %17 {offsets = [0, 0], sizes = [16, 1], strides = [1, 1]} : vector<16x256xf32> to vector<16x1xf32>
    %33 = tpu.concatenate %31, %32 in 1 : vector<16x255xf32>, vector<16x1xf32> -> vector<16x256xf32>
    %34 = vector.extract_strided_slice %17 {offsets = [0, 255], sizes = [16, 1], strides = [1, 1]} : vector<16x256xf32> to vector<16x1xf32>
    %35 = vector.extract_strided_slice %17 {offsets = [0, 0], sizes = [16, 255], strides = [1, 1]} : vector<16x256xf32> to vector<16x255xf32>
    %36 = tpu.concatenate %34, %35 in 1 : vector<16x1xf32>, vector<16x255xf32> -> vector<16x256xf32>
    %37 = arith.mulf %17, %28 : vector<16x256xf32>
    %38 = arith.mulf %33, %30 : vector<16x256xf32>
    %39 = arith.addf %37, %38 : vector<16x256xf32>
    %40 = arith.mulf %36, %29 : vector<16x256xf32>
    %41 = arith.addf %39, %40 : vector<16x256xf32>
    %42 = vector.extract_strided_slice %28 {offsets = [0, 0], sizes = [16, 128], strides = [1, 1]} : vector<16x256xf32> to vector<16x128xf32>
    %43 = vector.extract_strided_slice %29 {offsets = [0, 0], sizes = [16, 128], strides = [1, 1]} : vector<16x256xf32> to vector<16x128xf32>
    %44 = vector.extract_strided_slice %30 {offsets = [0, 0], sizes = [16, 128], strides = [1, 1]} : vector<16x256xf32> to vector<16x128xf32>
    %45 = vector.extract_strided_slice %19 {offsets = [0, 1], sizes = [16, 127], strides = [1, 1]} : vector<16x128xf32> to vector<16x127xf32>
    %46 = vector.extract_strided_slice %19 {offsets = [0, 0], sizes = [16, 1], strides = [1, 1]} : vector<16x128xf32> to vector<16x1xf32>
    %47 = tpu.concatenate %45, %46 in 1 : vector<16x127xf32>, vector<16x1xf32> -> vector<16x128xf32>
    %48 = vector.extract_strided_slice %19 {offsets = [0, 127], sizes = [16, 1], strides = [1, 1]} : vector<16x128xf32> to vector<16x1xf32>
    %49 = vector.extract_strided_slice %19 {offsets = [0, 0], sizes = [16, 127], strides = [1, 1]} : vector<16x128xf32> to vector<16x127xf32>
    %50 = tpu.concatenate %48, %49 in 1 : vector<16x1xf32>, vector<16x127xf32> -> vector<16x128xf32>
    %51 = arith.mulf %19, %42 : vector<16x128xf32>
    %52 = arith.mulf %47, %44 : vector<16x128xf32>
    %53 = arith.addf %51, %52 : vector<16x128xf32>
    %54 = arith.mulf %50, %43 : vector<16x128xf32>
    %55 = arith.addf %53, %54 : vector<16x128xf32>
    %56 = arith.truncf %41 : vector<16x256xf32> to vector<16x256xbf16>
    %57 = arith.truncf %55 : vector<16x128xf32> to vector<16x128xbf16>
    %58 = arith.truncf %21 : vector<16x128xf32> to vector<16x128xbf16>
    %59 = tpu.iota {dimensions = array<i32: 0>} : vector<16x16xi32>
    %60 = tpu.iota {dimensions = array<i32: 1>} : vector<16x16xi32>
    %61 = arith.cmpi sge, %59, %60 : vector<16x16xi32>
    %cst_21 = arith.constant 0.000000e+00 : f32
    %cst_22 = arith.constant -1.000000e+30 : f32
    %62 = vector.broadcast %cst_21 : f32 to vector<16x16xf32>
    %63 = vector.broadcast %cst_22 : f32 to vector<16x16xf32>
    %64 = arith.select %61, %62, %63 : vector<16x16xi1>, vector<16x16xf32>
    %65 = tpu.concatenate %64, %64 in 0 : vector<16x16xf32>, vector<16x16xf32> -> vector<32x16xf32>
    %66 = vector.extract_strided_slice %57 {offsets = [0, 0], sizes = [16, 32], strides = [1, 1]} : vector<16x128xbf16> to vector<16x32xbf16>
    %67 = vector.extract_strided_slice %58 {offsets = [0, 0], sizes = [16, 32], strides = [1, 1]} : vector<16x128xbf16> to vector<16x32xbf16>
    %68 = vector.extract_strided_slice %56 {offsets = [0, 0], sizes = [16, 32], strides = [1, 1]} : vector<16x256xbf16> to vector<16x32xbf16>
    %69 = vector.extract_strided_slice %56 {offsets = [0, 32], sizes = [16, 32], strides = [1, 1]} : vector<16x256xbf16> to vector<16x32xbf16>
    %70 = tpu.concatenate %68, %69 in 0 : vector<16x32xbf16>, vector<16x32xbf16> -> vector<32x32xbf16>
    %cst_23 = arith.constant dense<0.000000e+00> : vector<32x16xf32>
    %71 = tpu.matmul %70, %66, %cst_23 {dimension_numbers = #tpu.dot_dimension_numbers<[1], [1], [0], [0], [0, 0, 1, 0], [], []>} : vector<32x32xbf16>, vector<16x32xbf16>, vector<32x16xf32> -> vector<32x16xf32>
    %72 = arith.addf %71, %65 : vector<32x16xf32>
    %cst_24 = arith.constant dense<0xFF800000> : vector<32xf32>
    %73 = vector.multi_reduction <maximumf>, %72, %cst_24 [1] : vector<32x16xf32> to vector<32xf32>
    %74 = vector.shape_cast %73 : vector<32xf32> to vector<32x1xf32>
    %75 = vector.broadcast %74 : vector<32x1xf32> to vector<32x16xf32>
    %76 = arith.subf %72, %75 : vector<32x16xf32>
    %77 = math.exp %76 : vector<32x16xf32>
    %cst_25 = arith.constant dense<0.000000e+00> : vector<32xf32>
    %78 = vector.multi_reduction <add>, %77, %cst_25 [1] : vector<32x16xf32> to vector<32xf32>
    %79 = vector.shape_cast %78 : vector<32xf32> to vector<32x1xf32>
    %80 = vector.broadcast %79 : vector<32x1xf32> to vector<32x16xf32>
    %81 = arith.divf %77, %80 : vector<32x16xf32>
    %82 = arith.truncf %81 : vector<32x16xf32> to vector<32x16xbf16>
    %cst_26 = arith.constant dense<0.000000e+00> : vector<32x32xf32>
    %83 = tpu.matmul %82, %67, %cst_26 {dimension_numbers = #tpu.dot_dimension_numbers<[1], [0], [0], [1], [0, 0, 1, 1], [], []>} : vector<32x16xbf16>, vector<16x32xbf16>, vector<32x32xf32> -> vector<32x32xf32>
    %84 = vector.extract_strided_slice %83 {offsets = [0, 0], sizes = [16, 32], strides = [1, 1]} : vector<32x32xf32> to vector<16x32xf32>
    %85 = vector.extract_strided_slice %83 {offsets = [16, 0], sizes = [16, 32], strides = [1, 1]} : vector<32x32xf32> to vector<16x32xf32>
    %86 = vector.extract_strided_slice %57 {offsets = [0, 32], sizes = [16, 32], strides = [1, 1]} : vector<16x128xbf16> to vector<16x32xbf16>
    %87 = vector.extract_strided_slice %58 {offsets = [0, 32], sizes = [16, 32], strides = [1, 1]} : vector<16x128xbf16> to vector<16x32xbf16>
    %88 = vector.extract_strided_slice %56 {offsets = [0, 64], sizes = [16, 32], strides = [1, 1]} : vector<16x256xbf16> to vector<16x32xbf16>
    %89 = vector.extract_strided_slice %56 {offsets = [0, 96], sizes = [16, 32], strides = [1, 1]} : vector<16x256xbf16> to vector<16x32xbf16>
    %90 = tpu.concatenate %88, %89 in 0 : vector<16x32xbf16>, vector<16x32xbf16> -> vector<32x32xbf16>
    %cst_27 = arith.constant dense<0.000000e+00> : vector<32x16xf32>
    %91 = tpu.matmul %90, %86, %cst_27 {dimension_numbers = #tpu.dot_dimension_numbers<[1], [1], [0], [0], [0, 0, 1, 0], [], []>} : vector<32x32xbf16>, vector<16x32xbf16>, vector<32x16xf32> -> vector<32x16xf32>
    %92 = arith.addf %91, %65 : vector<32x16xf32>
    %cst_28 = arith.constant dense<0xFF800000> : vector<32xf32>
    %93 = vector.multi_reduction <maximumf>, %92, %cst_28 [1] : vector<32x16xf32> to vector<32xf32>
    %94 = vector.shape_cast %93 : vector<32xf32> to vector<32x1xf32>
    %95 = vector.broadcast %94 : vector<32x1xf32> to vector<32x16xf32>
    %96 = arith.subf %92, %95 : vector<32x16xf32>
    %97 = math.exp %96 : vector<32x16xf32>
    %cst_29 = arith.constant dense<0.000000e+00> : vector<32xf32>
    %98 = vector.multi_reduction <add>, %97, %cst_29 [1] : vector<32x16xf32> to vector<32xf32>
    %99 = vector.shape_cast %98 : vector<32xf32> to vector<32x1xf32>
    %100 = vector.broadcast %99 : vector<32x1xf32> to vector<32x16xf32>
    %101 = arith.divf %97, %100 : vector<32x16xf32>
    %102 = arith.truncf %101 : vector<32x16xf32> to vector<32x16xbf16>
    %cst_30 = arith.constant dense<0.000000e+00> : vector<32x32xf32>
    %103 = tpu.matmul %102, %87, %cst_30 {dimension_numbers = #tpu.dot_dimension_numbers<[1], [0], [0], [1], [0, 0, 1, 1], [], []>} : vector<32x16xbf16>, vector<16x32xbf16>, vector<32x32xf32> -> vector<32x32xf32>
    %104 = vector.extract_strided_slice %103 {offsets = [0, 0], sizes = [16, 32], strides = [1, 1]} : vector<32x32xf32> to vector<16x32xf32>
    %105 = vector.extract_strided_slice %103 {offsets = [16, 0], sizes = [16, 32], strides = [1, 1]} : vector<32x32xf32> to vector<16x32xf32>
    %106 = vector.extract_strided_slice %57 {offsets = [0, 64], sizes = [16, 32], strides = [1, 1]} : vector<16x128xbf16> to vector<16x32xbf16>
    %107 = vector.extract_strided_slice %58 {offsets = [0, 64], sizes = [16, 32], strides = [1, 1]} : vector<16x128xbf16> to vector<16x32xbf16>
    %108 = vector.extract_strided_slice %56 {offsets = [0, 128], sizes = [16, 32], strides = [1, 1]} : vector<16x256xbf16> to vector<16x32xbf16>
    %109 = vector.extract_strided_slice %56 {offsets = [0, 160], sizes = [16, 32], strides = [1, 1]} : vector<16x256xbf16> to vector<16x32xbf16>
    %110 = tpu.concatenate %108, %109 in 0 : vector<16x32xbf16>, vector<16x32xbf16> -> vector<32x32xbf16>
    %cst_31 = arith.constant dense<0.000000e+00> : vector<32x16xf32>
    %111 = tpu.matmul %110, %106, %cst_31 {dimension_numbers = #tpu.dot_dimension_numbers<[1], [1], [0], [0], [0, 0, 1, 0], [], []>} : vector<32x32xbf16>, vector<16x32xbf16>, vector<32x16xf32> -> vector<32x16xf32>
    %112 = arith.addf %111, %65 : vector<32x16xf32>
    %cst_32 = arith.constant dense<0xFF800000> : vector<32xf32>
    %113 = vector.multi_reduction <maximumf>, %112, %cst_32 [1] : vector<32x16xf32> to vector<32xf32>
    %114 = vector.shape_cast %113 : vector<32xf32> to vector<32x1xf32>
    %115 = vector.broadcast %114 : vector<32x1xf32> to vector<32x16xf32>
    %116 = arith.subf %112, %115 : vector<32x16xf32>
    %117 = math.exp %116 : vector<32x16xf32>
    %cst_33 = arith.constant dense<0.000000e+00> : vector<32xf32>
    %118 = vector.multi_reduction <add>, %117, %cst_33 [1] : vector<32x16xf32> to vector<32xf32>
    %119 = vector.shape_cast %118 : vector<32xf32> to vector<32x1xf32>
    %120 = vector.broadcast %119 : vector<32x1xf32> to vector<32x16xf32>
    %121 = arith.divf %117, %120 : vector<32x16xf32>
    %122 = arith.truncf %121 : vector<32x16xf32> to vector<32x16xbf16>
    %cst_34 = arith.constant dense<0.000000e+00> : vector<32x32xf32>
    %123 = tpu.matmul %122, %107, %cst_34 {dimension_numbers = #tpu.dot_dimension_numbers<[1], [0], [0], [1], [0, 0, 1, 1], [], []>} : vector<32x16xbf16>, vector<16x32xbf16>, vector<32x32xf32> -> vector<32x32xf32>
    %124 = vector.extract_strided_slice %123 {offsets = [0, 0], sizes = [16, 32], strides = [1, 1]} : vector<32x32xf32> to vector<16x32xf32>
    %125 = vector.extract_strided_slice %123 {offsets = [16, 0], sizes = [16, 32], strides = [1, 1]} : vector<32x32xf32> to vector<16x32xf32>
    %126 = vector.extract_strided_slice %57 {offsets = [0, 96], sizes = [16, 32], strides = [1, 1]} : vector<16x128xbf16> to vector<16x32xbf16>
    %127 = vector.extract_strided_slice %58 {offsets = [0, 96], sizes = [16, 32], strides = [1, 1]} : vector<16x128xbf16> to vector<16x32xbf16>
    %128 = vector.extract_strided_slice %56 {offsets = [0, 192], sizes = [16, 32], strides = [1, 1]} : vector<16x256xbf16> to vector<16x32xbf16>
    %129 = vector.extract_strided_slice %56 {offsets = [0, 224], sizes = [16, 32], strides = [1, 1]} : vector<16x256xbf16> to vector<16x32xbf16>
    %130 = tpu.concatenate %128, %129 in 0 : vector<16x32xbf16>, vector<16x32xbf16> -> vector<32x32xbf16>
    %cst_35 = arith.constant dense<0.000000e+00> : vector<32x16xf32>
    %131 = tpu.matmul %130, %126, %cst_35 {dimension_numbers = #tpu.dot_dimension_numbers<[1], [1], [0], [0], [0, 0, 1, 0], [], []>} : vector<32x32xbf16>, vector<16x32xbf16>, vector<32x16xf32> -> vector<32x16xf32>
    %132 = arith.addf %131, %65 : vector<32x16xf32>
    %cst_36 = arith.constant dense<0xFF800000> : vector<32xf32>
    %133 = vector.multi_reduction <maximumf>, %132, %cst_36 [1] : vector<32x16xf32> to vector<32xf32>
    %134 = vector.shape_cast %133 : vector<32xf32> to vector<32x1xf32>
    %135 = vector.broadcast %134 : vector<32x1xf32> to vector<32x16xf32>
    %136 = arith.subf %132, %135 : vector<32x16xf32>
    %137 = math.exp %136 : vector<32x16xf32>
    %cst_37 = arith.constant dense<0.000000e+00> : vector<32xf32>
    %138 = vector.multi_reduction <add>, %137, %cst_37 [1] : vector<32x16xf32> to vector<32xf32>
    %139 = vector.shape_cast %138 : vector<32xf32> to vector<32x1xf32>
    %140 = vector.broadcast %139 : vector<32x1xf32> to vector<32x16xf32>
    %141 = arith.divf %137, %140 : vector<32x16xf32>
    %142 = arith.truncf %141 : vector<32x16xf32> to vector<32x16xbf16>
    %cst_38 = arith.constant dense<0.000000e+00> : vector<32x32xf32>
    %143 = tpu.matmul %142, %127, %cst_38 {dimension_numbers = #tpu.dot_dimension_numbers<[1], [0], [0], [1], [0, 0, 1, 1], [], []>} : vector<32x16xbf16>, vector<16x32xbf16>, vector<32x32xf32> -> vector<32x32xf32>
    %144 = vector.extract_strided_slice %143 {offsets = [0, 0], sizes = [16, 32], strides = [1, 1]} : vector<32x32xf32> to vector<16x32xf32>
    %145 = vector.extract_strided_slice %143 {offsets = [16, 0], sizes = [16, 32], strides = [1, 1]} : vector<32x32xf32> to vector<16x32xf32>
    %146 = tpu.concatenate %84, %85, %104, %105, %124, %125, %144, %145 in 1 : vector<16x32xf32>, vector<16x32xf32>, vector<16x32xf32>, vector<16x32xf32>, vector<16x32xf32>, vector<16x32xf32>, vector<16x32xf32>, vector<16x32xf32> -> vector<16x256xf32>
    %147 = arith.truncf %146 : vector<16x256xf32> to vector<16x256xbf16>
    %c0_39 = arith.constant 0 : index
    %c0_40 = arith.constant 0 : index
    %148 = vector.load %arg10[%c0_39, %c0_40] : memref<128x256xbf16, #tpu.memory_space<vmem>>, vector<128x256xbf16>
    %cst_41 = arith.constant dense<0.000000e+00> : vector<16x128xf32>
    %149 = tpu.matmul %147, %148, %cst_41 {dimension_numbers = #tpu.dot_dimension_numbers<[1], [1], [0], [0], [0, 0, 1, 0], [], []>} : vector<16x256xbf16>, vector<128x256xbf16>, vector<16x128xf32> -> vector<16x128xf32>
    %150 = arith.addf %1, %149 : vector<16x128xf32>
    %c0_42 = arith.constant 0 : index
    %c0_43 = arith.constant 0 : index
    %151 = vector.load %arg3[%c0_42, %c0_43] : memref<1x128xf32, #tpu.memory_space<vmem>>, vector<1x128xf32>
    %152 = arith.mulf %150, %150 : vector<16x128xf32>
    %cst_44 = arith.constant dense<0.000000e+00> : vector<16xf32>
    %153 = vector.multi_reduction <add>, %152, %cst_44 [1] : vector<16x128xf32> to vector<16xf32>
    %154 = vector.shape_cast %153 : vector<16xf32> to vector<16x1xf32>
    %cst_45 = arith.constant 1.280000e+02 : f32
    %155 = vector.broadcast %cst_45 : f32 to vector<16x1xf32>
    %156 = arith.divf %154, %155 : vector<16x1xf32>
    %cst_46 = arith.constant 1.1920929E-7 : f32
    %157 = vector.broadcast %cst_46 : f32 to vector<16x1xf32>
    %158 = arith.addf %156, %157 : vector<16x1xf32>
    %159 = math.rsqrt %158 : vector<16x1xf32>
    %160 = vector.broadcast %159 : vector<16x1xf32> to vector<16x128xf32>
    %161 = arith.mulf %150, %160 : vector<16x128xf32>
    %162 = vector.broadcast %151 : vector<1x128xf32> to vector<16x128xf32>
    %163 = arith.mulf %161, %162 : vector<16x128xf32>
    %164 = arith.truncf %163 : vector<16x128xf32> to vector<16x128xbf16>
    %c0_47 = arith.constant 0 : index
    %c0_48 = arith.constant 0 : index
    %165 = vector.load %arg11[%c0_47, %c0_48] : memref<384x128xbf16, #tpu.memory_space<vmem>>, vector<384x128xbf16>
    %cst_49 = arith.constant dense<0.000000e+00> : vector<16x384xf32>
    %166 = tpu.matmul %164, %165, %cst_49 {dimension_numbers = #tpu.dot_dimension_numbers<[1], [1], [0], [0], [0, 0, 1, 0], [], []>} : vector<16x128xbf16>, vector<384x128xbf16>, vector<16x384xf32> -> vector<16x384xf32>
    %c0_50 = arith.constant 0 : index
    %c0_51 = arith.constant 0 : index
    %167 = vector.load %arg12[%c0_50, %c0_51] : memref<384x128xbf16, #tpu.memory_space<vmem>>, vector<384x128xbf16>
    %cst_52 = arith.constant dense<0.000000e+00> : vector<16x384xf32>
    %168 = tpu.matmul %164, %167, %cst_52 {dimension_numbers = #tpu.dot_dimension_numbers<[1], [1], [0], [0], [0, 0, 1, 0], [], []>} : vector<16x128xbf16>, vector<384x128xbf16>, vector<16x384xf32> -> vector<16x384xf32>
    %cst_53 = arith.constant 0.000000e+00 : f32
    %169 = vector.broadcast %cst_53 : f32 to vector<16x384xf32>
    %170 = arith.subf %169, %166 : vector<16x384xf32>
    %171 = math.exp %170 : vector<16x384xf32>
    %cst_54 = arith.constant 1.000000e+00 : f32
    %172 = vector.broadcast %cst_54 : f32 to vector<16x384xf32>
    %173 = arith.addf %172, %171 : vector<16x384xf32>
    %cst_55 = arith.constant 1.000000e+00 : f32
    %174 = vector.broadcast %cst_55 : f32 to vector<16x384xf32>
    %175 = arith.divf %174, %173 : vector<16x384xf32>
    %176 = arith.mulf %166, %175 : vector<16x384xf32>
    %177 = arith.mulf %176, %168 : vector<16x384xf32>
    %178 = arith.truncf %177 : vector<16x384xf32> to vector<16x384xbf16>
    %c0_56 = arith.constant 0 : index
    %c0_57 = arith.constant 0 : index
    %179 = vector.load %arg13[%c0_56, %c0_57] : memref<128x384xbf16, #tpu.memory_space<vmem>>, vector<128x384xbf16>
    %cst_58 = arith.constant dense<0.000000e+00> : vector<16x128xf32>
    %180 = tpu.matmul %178, %179, %cst_58 {dimension_numbers = #tpu.dot_dimension_numbers<[1], [1], [0], [0], [0, 0, 1, 0], [], []>} : vector<16x384xbf16>, vector<128x384xbf16>, vector<16x128xf32> -> vector<16x128xf32>
    %181 = arith.addf %150, %180 : vector<16x128xf32>
    %c0_59 = arith.constant 0 : index
    %c0_60 = arith.constant 0 : index
    %c0_61 = arith.constant 0 : index
    %182 = vector.load %arg14[%c0_59, %c0_60, %c0_61] : memref<1x16x128xf32, #tpu.memory_space<vmem>>, vector<1x16x128xf32>
    %183 = vector.shape_cast %182 : vector<1x16x128xf32> to vector<16x128xf32>
    %184 = vector.shape_cast %181 : vector<16x128xf32> to vector<1x16x128xf32>
    tpu.vector_store %arg14[%c0_59, %c0_60, %c0_61], %184 {strides = array<i32>} : memref<1x16x128xf32, #tpu.memory_space<vmem>>, vector<1x16x128xf32>,
    return
  }
  func.func @transform_0(%arg0: i32) -> (i32, i32, i32) {
    %c0_i32 = arith.constant 0 : i32
    %c0_i32_0 = arith.constant 0 : i32
    %c0_i32_1 = arith.constant 0 : i32
    return %arg0, %c0_i32, %c0_i32_0 : i32, i32, i32
  }
  func.func @transform_1(%arg0: i32) -> (i32, i32) {
    %c0_i32 = arith.constant 0 : i32
    %c0_i32_0 = arith.constant 0 : i32
    %c0_i32_1 = arith.constant 0 : i32
    return %c0_i32, %c0_i32_0 : i32, i32
  }
  func.func @transform_2(%arg0: i32) -> (i32, i32) {
    %c0_i32 = arith.constant 0 : i32
    %c0_i32_0 = arith.constant 0 : i32
    %c0_i32_1 = arith.constant 0 : i32
    return %c0_i32, %c0_i32_0 : i32, i32
  }
  func.func @transform_3(%arg0: i32) -> (i32, i32) {
    %c0_i32 = arith.constant 0 : i32
    %c0_i32_0 = arith.constant 0 : i32
    %c0_i32_1 = arith.constant 0 : i32
    return %c0_i32, %c0_i32_0 : i32, i32
  }
  func.func @transform_4(%arg0: i32) -> (i32, i32) {
    %c0_i32 = arith.constant 0 : i32
    %c0_i32_0 = arith.constant 0 : i32
    %c0_i32_1 = arith.constant 0 : i32
    return %c0_i32, %c0_i32_0 : i32, i32
  }
  func.func @transform_5(%arg0: i32) -> (i32, i32) {
    %c0_i32 = arith.constant 0 : i32
    %c0_i32_0 = arith.constant 0 : i32
    %c0_i32_1 = arith.constant 0 : i32
    return %c0_i32, %c0_i32_0 : i32, i32
  }
  func.func @transform_6(%arg0: i32) -> (i32, i32) {
    %c0_i32 = arith.constant 0 : i32
    %c0_i32_0 = arith.constant 0 : i32
    %c0_i32_1 = arith.constant 0 : i32
    return %c0_i32, %c0_i32_0 : i32, i32
  }
  func.func @transform_7(%arg0: i32) -> (i32, i32) {
    %c0_i32 = arith.constant 0 : i32
    %c0_i32_0 = arith.constant 0 : i32
    %c0_i32_1 = arith.constant 0 : i32
    return %c0_i32, %c0_i32_0 : i32, i32
  }
  func.func @transform_8(%arg0: i32) -> (i32, i32) {
    %c0_i32 = arith.constant 0 : i32
    %c0_i32_0 = arith.constant 0 : i32
    %c0_i32_1 = arith.constant 0 : i32
    return %c0_i32, %c0_i32_0 : i32, i32
  }
  func.func @transform_9(%arg0: i32) -> (i32, i32) {
    %c0_i32 = arith.constant 0 : i32
    %c0_i32_0 = arith.constant 0 : i32
    %c0_i32_1 = arith.constant 0 : i32
    return %c0_i32, %c0_i32_0 : i32, i32
  }
  func.func @transform_10(%arg0: i32) -> (i32, i32) {
    %c0_i32 = arith.constant 0 : i32
    %c0_i32_0 = arith.constant 0 : i32
    %c0_i32_1 = arith.constant 0 : i32
    return %c0_i32, %c0_i32_0 : i32, i32
  }
  func.func @transform_11(%arg0: i32) -> (i32, i32) {
    %c0_i32 = arith.constant 0 : i32
    %c0_i32_0 = arith.constant 0 : i32
    %c0_i32_1 = arith.constant 0 : i32
    return %c0_i32, %c0_i32_0 : i32, i32
  }
  func.func @transform_12(%arg0: i32) -> (i32, i32) {
    %c0_i32 = arith.constant 0 : i32
    %c0_i32_0 = arith.constant 0 : i32
    %c0_i32_1 = arith.constant 0 : i32
    return %c0_i32, %c0_i32_0 : i32, i32
  }
  func.func @transform_13(%arg0: i32) -> (i32, i32, i32) {
    %c0_i32 = arith.constant 0 : i32
    %c0_i32_0 = arith.constant 0 : i32
    %c0_i32_1 = arith.constant 0 : i32
    return %arg0, %c0_i32, %c0_i32_0 : i32, i32, i32
  }
}

</mosaic_0001>

<bundles_post_ra>
// kernel: tpu_custom_call.1
= control target key start
LH: loop header
LB: loop body
LE: loop exit
PB: predicated region body
PF: predicated region fallthrough
CT: control target
= control target key end

     0   :  { %s5532_s0 = inlined_call_operand.hbm [shape: f32[2,16,128], index: 0, kind: input, shape index: {}]   ;;  %s5533_s1 = inlined_call_operand.hbm [shape: f32[1,128], index: 1, kind: input, shape index: {}]   ;;  %s5534_s2 = inlined_call_operand.vmem [shape: f32[1,128], index: 2, kind: input, shape index: {}]   ;;  %s5535_s3 = inlined_call_operand.hbm [shape: bf16[16,32], index: 3, kind: input, shape index: {}]   ;;  %s5536_s4 = inlined_call_operand.hbm [shape: bf16[16,32], index: 4, kind: input, shape index: {}]   ;;  %s5537_s5 = inlined_call_operand.hbm [shape: bf16[16,32], index: 5, kind: input, shape index: {}]   ;;  %s5538_s6 = inlined_call_operand.hbm [shape: bf16[256,128], index: 6, kind: input, shape index: {}]   ;;  %s5539_s7 = inlined_call_operand.hbm [shape: bf16[128,128], index: 7, kind: input, shape index: {}]   ;;  %s5540_s8 = inlined_call_operand.hbm [shape: bf16[128,128], index: 8, kind: input, shape index: {}]   ;;  %s5541_s9 = inlined_call_operand.hbm [shape: bf16[128,256], index: 9, kind: input, shape index: {}]   ;;  %s5542_s10 = inlined_call_operand.hbm [shape: bf16[384,128], index: 10, kind: input, shape index: {}]   ;;  %s5543_s11 = inlined_call_operand.hbm [shape: bf16[384,128], index: 11, kind: input, shape index: {}]   ;;  %s5544_s12 = inlined_call_operand.hbm [shape: bf16[128,384], index: 12, kind: input, shape index: {}]   ;;  %s5545_s13 = inlined_call_operand.hbm [shape: f32[2,16,128], index: 13, kind: output, shape index: {}]  }
   0x1   :  { %5549 = sst [smem:[#allocation31_spill]] %s5533_s1 }
   0x2   :  { %5550 = sst [smem:[#allocation32_spill]] %s5535_s3 }
   0x3   :  { %5551 = sst [smem:[#allocation33_spill]] %s5536_s4 }
   0x4   :  { %5552 = sst [smem:[#allocation34_spill]] %s5537_s5 }
   0x5   :  { %5553 = sst [smem:[#allocation35_spill]] %s5538_s6 }
   0x6   :  { %5554 = sst [smem:[#allocation36_spill]] %s5539_s7 }
   0x7   :  { %5555 = sst [smem:[#allocation37_spill]] %s5545_s13 }
   0x8   :  { %18 = vsyncpa [#allocation3], 0 }
   0x9   :  { %20 = vsyncpa [#allocation3 + $0x1], 0 }
   0xa   :  { %21 = vsyncpa [#allocation6], 0 }
   0xb   :  { %22 = vsyncpa [#allocation9], 0 }
   0xc   :  { %23 = vsyncpa [#allocation12], 0 }
   0xd   :  { %24 = vsyncpa [#allocation15], 0 }
   0xe   :  { %25 = vsyncpa [#allocation18], 0 }
   0xf   :  { %26 = vsyncpa [#allocation21], 0 }
  0x10   :  { %27 = vsyncpa [#allocation4], 0 }
  0x11   :  { %29 = vsyncpa [#allocation4 + $0x1], 0  ;;  %s4636_s25 = smov 0   ;;  %s4638_s26 = smov 0  }
  0x12   :  { %s4640_s27 = smov 0   ;;  %s4642_s28 = smov 0  }
  0x13 LB: > { %s5556_s1 = sld [smem:[#allocation31_spill]]  ;;  %s4660_s15 = sadd.s32 4294967295, %s4538_s28   ;;  %s4538_s28 = sphi %s4642_s28, %s5597_s28   ;;  %s4534_s27 = sphi %s4640_s27, %s5596_s27   ;;  %s4530_s26 = sphi %s4638_s26, %s5595_s26   ;;  %s4526_s25 = sphi %s4636_s25, %s5594_s25  }
  0x14   : > { %p3072_p0 = scmp.ge.s32.totalorder %s4538_s28, 1  ;;  %p56_p1 = scmp.eq.s32.totalorder %s4660_s15, 0 }
  0x15   : > { %p344_p2 = scmp.lt.s32.totalorder %s4538_s28, 3  ;;  %s4540_s17 = smov [#allocation5]  }
  0x16   : > { %s358_s18 = sshll.u32 %s4540_s17, 4  ;;  %s5558_s4 = sld [smem:[#allocation33_spill]]  ;;  %s359_s18 = int_to_ptr.vmem [resolvable:$true] %s358_s18 }
  0x17   : > { %p4665_p3 = pnand %p3072_p0, %p344_p2  ;;  %s5560_s6 = sld [smem:[#allocation35_spill]] }
  0x18   : > { %s4541_s30 = smov [#allocation8]   ;;  %s4542_s19 = smov 64  }
  0x19   : > { %s356_s14 = sshll.u32 %s5556_s1, 4  ;;  %p3787_p5 = pneg %p4665_p3  ;;  %s357_s14 = int_to_ptr.hbm [resolvable:$true] %s356_s14 }
  0x1a   : > { %s386_s17 = sshll.u32 %s4541_s30, 4  ;;  %s4543_s20 = smov 4   ;;  %s387_s17 = int_to_ptr.vmem [resolvable:$true] %s386_s17 }
  0x1b   : > { %p4677_p6 = pnand %p3787_p5, %p56_p1  ;;  %s440_s13 = sshll.u32 %s5540_s8, 4  ;;  %s441_s13 = int_to_ptr.hbm [resolvable:$true] %s440_s13 }
  0x1c   : > { %s384_s21 = sshll.u32 %s5558_s4, 4  ;;  %s4544_s23 = smov [#allocation11]   ;;  %s385_s21 = int_to_ptr.hbm [resolvable:$true] %s384_s21 }
  0x1d   : > { %s412_s29 = sshll.u32 %s5560_s6, 4  ;;  %s414_s24 = sshll.u32 %s4544_s23, 4  ;;  %s413_s29 = int_to_ptr.hbm [resolvable:$true] %s412_s29  ;;  %s415_s24 = int_to_ptr.vmem [resolvable:$true] %s414_s24 }
  0x1e   : > { %3790 = dma.hbm_to_vmem [thread:$0]  (!%p4677_p6), %s357_s14, 16, %s359_s18, [#allocation6]  }
  0x1f   : > { %3796 = dma.hbm_to_vmem [thread:$0]  (!%p4677_p6), %s385_s21, 128, %s387_s17, [#allocation9], %s4542_s19, %s4542_s19, %s4543_s20  }
  0x20   : > { %3802 = dma.hbm_to_vmem [thread:$0]  (!%p4677_p6), %s413_s29, 2048, %s415_s24, [#allocation12], %s4542_s19, %s4542_s19, %s4543_s20  }
  0x21   : > { %s4545_s14 = smov [#allocation14]   ;;  %s468_s21 = sshll.u32 %s5542_s10, 4  ;;  %s469_s21 = int_to_ptr.hbm [resolvable:$true] %s468_s21 }
  0x22   : > { %s442_s18 = sshll.u32 %s4545_s14, 4  ;;  %s5561_s3 = sld [smem:[#allocation32_spill]]  ;;  %s443_s18 = int_to_ptr.vmem [resolvable:$true] %s442_s18 }
  0x23   : > { %3808 = dma.hbm_to_vmem [thread:$0]  (!%p4677_p6), %s441_s13, 1024, %s443_s18, [#allocation15], %s4542_s19, %s4542_s19, %s4543_s20  }
  0x24   : > { %s4546_s23 = smov [#allocation17]   ;;  %s4547_s6 = smov [#allocation7]  }
  0x25   : > { %s470_s29 = sshll.u32 %s4546_s23, 4  ;;  %s372_s24 = sshll.u32 %s4547_s6, 4  ;;  %s471_s29 = int_to_ptr.vmem [resolvable:$true] %s470_s29  ;;  %s373_s24 = int_to_ptr.vmem [resolvable:$true] %s372_s24 }
  0x26   : > { %3814 = dma.hbm_to_vmem [thread:$0]  (!%p4677_p6), %s469_s21, 3072, %s471_s29, [#allocation18], %s4542_s19, %s4542_s19, %s4543_s20  }
  0x27   : > { %s5562_s5 = sld [smem:[#allocation34_spill]]  ;;  %s4548_s23 = smov [#allocation10]  }
  0x28   : > { %s370_s17 = sshll.u32 %s5561_s3, 4  ;;  %s5563_s7 = sld [smem:[#allocation36_spill]]  ;;  %s371_s17 = int_to_ptr.hbm [resolvable:$true] %s370_s17 }
  0x29   : > { %3793 = dma.hbm_to_vmem [thread:$0]  (!%p4677_p6), %s371_s17, 128, %s373_s24, [#allocation6], %s4542_s19, %s4542_s19, %s4543_s20  }
  0x2a   : > { %s400_s21 = sshll.u32 %s4548_s23, 4  ;;  %s4549_s29 = smov [#allocation13]   ;;  %s401_s21 = int_to_ptr.vmem [resolvable:$true] %s400_s21 }
  0x2b   : > { %s428_s6 = sshll.u32 %s4549_s29, 4  ;;  %s454_s17 = sshll.u32 %s5541_s9, 4  ;;  %s429_s6 = int_to_ptr.vmem [resolvable:$true] %s428_s6  ;;  %s455_s17 = int_to_ptr.hbm [resolvable:$true] %s454_s17 }
  0x2c   : > { %s4550_s24 = smov [#allocation16]   ;;  %s5548_s29 = smov 8  }
  0x2d   : > { %s398_s13 = sshll.u32 %s5562_s5, 4  ;;  %s456_s18 = sshll.u32 %s4550_s24, 4  ;;  %s399_s13 = int_to_ptr.hbm [resolvable:$true] %s398_s13  ;;  %s457_s18 = int_to_ptr.vmem [resolvable:$true] %s456_s18 }
  0x2e   : > { %s426_s4 = sshll.u32 %s5563_s7, 4  ;;  %s496_s24 = sshll.u32 %s5544_s12, 4  ;;  %s427_s4 = int_to_ptr.hbm [resolvable:$true] %s426_s4  ;;  %s497_s24 = int_to_ptr.hbm [resolvable:$true] %s496_s24 }
  0x2f   : > { %3799 = dma.hbm_to_vmem [thread:$0]  (!%p4677_p6), %s399_s13, 128, %s401_s21, [#allocation9], %s4542_s19, %s4542_s19, %s4543_s20  }
  0x30   : > { %3805 = dma.hbm_to_vmem [thread:$0]  (!%p4677_p6), %s427_s4, 1024, %s429_s6, [#allocation12], %s4542_s19, %s4542_s19, %s4543_s20  }
  0x31   : > { %s482_s13 = sshll.u32 %s5543_s11, 4  ;;  %s5547_s21 = smov 128   ;;  %s483_s13 = int_to_ptr.hbm [resolvable:$true] %s482_s13 }
  0x32   : > { %3811 = dma.hbm_to_vmem [thread:$0]  (!%p4677_p6), %s455_s17, 2048, %s457_s18, [#allocation15], %s5547_s21, %s5547_s21, %s5548_s29  }
  0x33   : > { %s4553_s4 = smov [#allocation19]   ;;  %s4554_s17 = smov [#allocation20]  }
  0x34   : > { %s484_s6 = sshll.u32 %s4553_s4, 4  ;;  %s498_s18 = sshll.u32 %s4554_s17, 4  ;;  %s485_s6 = int_to_ptr.vmem [resolvable:$true] %s484_s6  ;;  %s499_s18 = int_to_ptr.vmem [resolvable:$true] %s498_s18 }
  0x35   : > { %3817 = dma.hbm_to_vmem [thread:$0]  (!%p4677_p6), %s483_s13, 3072, %s485_s6, [#allocation18], %s4542_s19, %s4542_s19, %s4543_s20  }
  0x36   : > { %s4555_s1 = smov 192   ;;  %s4556_s23 = smov 12  }
  0x37   : > { %3820 = dma.hbm_to_vmem [thread:$0]  (!%p4677_p6), %s497_s24, 3072, %s499_s18, [#allocation21], %s4555_s1, %s4555_s1, %s4556_s23  }
  0x38   : > { %s3071_s4 = sadd.s32 4294967294, %s4538_s28   ;;  %s4759_s14 = sadd.s32 1, %s4538_s28  }
  0x39   : > { %s42_s30 = sadd.s32 1, %s4534_s27  ;;  %s39_s21 = ssub.s32 %s4538_s28, %s4759_s14 }
  0x3a   : > { %p49_p7 = scmp.ne.s32.totalorder %s4534_s27, %s4530_s26  ;;  %p40_p8 = scmp.eq.s32.totalorder %s39_s21, 0 }
  0x3b   : > { %p50_p9 = scmp.eq.s32.totalorder %s4538_s28, 0  ;;  %p55_p10 = scmp.ne.s32.totalorder %s4530_s26, %s4526_s25 }
  0x3c   : > { %p331_p11 = scmp.eq.s32.totalorder %s4660_s15, 1  ;;  %p337_p0 = scmp.eq.s32.totalorder %s3071_s4, 1 }
  0x3d   : > { %s4771_s19 = scalar_select %p40_p8, %s4534_s27, %s42_s30  }
  0x3e   : > { %p4775_p12 = por %p56_p1, %p55_p10  ;;  %p4779_p13 = por %p331_p11, %p49_p7 }
  0x3f   : > { %p51_p2 = por %p50_p9, %p49_p7  ;;  %s512_s13 = sand.u32 1, %s4534_s27  }
  0x40   : > { %p4784_p5 = por %p337_p0, %p55_p10  ;;  %p3840_p6 = scmp.lt.s32.totalorder %s4538_s28, 2 }
  0x41   : > { %s3085_s21 = sshll.u32 %s512_s13, 4  ;;  %s3603_s24 = sshll.u32 %s4538_s28, 4 }
  0x42   : > { %s521_s1 = scalar_lea.hbm %s5532_s0, %s3603_s24  ;;  %s516_s30 = scalar_lea.vmem [#allocation2], %s3085_s21 }
  0x43   : > { %s522_s23 = sshll.u32 %s521_s1, 4  ;;  %s524_s29 = sshll.u32 %s516_s30, 4  ;;  %s523_s23 = int_to_ptr.hbm [resolvable:$true] %s522_s23  ;;  %s525_s29 = int_to_ptr.vmem [resolvable:$true] %s524_s29 }
  0x44   : > { %p4793_p8 = pnand %p3840_p6, %p51_p2  ;;  %s513_s3 = scalar_lea.sflag [#allocation3], %s512_s13 }
  0x45   : > { %s4418_s5 = sshra.s32 %s523_s23, 4  ;;  %s4425_s21 = scalar_lea.hbm %s5532_s0, 32  ;;  %s4419_s5 = int_to_ptr.hbm [resolvable:$true] %s4418_s5 }
  0x46   : > { %s4420_s7 = scalar_lea.hbm %s4419_s5, 16  ;;  %p4422_p9 = pneg %p4793_p8 }
  0x47   : > { %p4421_p7 = scmp.ne.s32.totalorder %s4419_s5, %s4420_s7  ;;  %p4426_p0 = scmp.lt.s32.totalorder %s4419_s5, %s5532_s0 }
  0x48   : > { %p4427_p2 = scmp.lt.s32.totalorder %s4425_s21, %s4420_s7 }
  0x49   : > { %p4423_p10 = pnand %p4422_p9, %p4421_p7 }
  0x4a   : > { %p4428_p6 = por %p4427_p2, %p4426_p0 }
  0x4b   : > { %p4424_p11 = pneg %p4423_p10 }
  0x4d   : > { %p4429_p4 = pnand %p4428_p6, %p4424_p11 }
  0x4f   : > { %4432 = shalt.err (!%p4429_p4)
}
  0x50   : > { %s5568_s13 = smov 8   ;;  %s5569_s30 = smov 128  }
  0x51   : > { %3824 = dma.hbm_to_vmem [thread:$0]  (!%p4793_p8), %s523_s23, 256, %s525_s29, %s513_s3, %s5569_s30, %s5569_s30, %s5568_s13  }
  0x52   : > { %536 = sbr.rel (%p4665_p3) target bundleno = 2423 (0x977), region = 72  ;;  %s4813_s24 = sand.u32 (!%p4665_p3), 1, %s4530_s26  }
  0x53   : > { %s3089_s5 = sshll.u32 (!%p4665_p3), %s4813_s24, 4  ;;  %s539_s7 = scalar_lea.sflag (!%p4665_p3), [#allocation3], %s4813_s24 }
  0x54   : > { %s4819_s17 = scalar_lea.vmem (!%p4665_p3), [#allocation2], %s3089_s5 }
  0x57   : > { %4493 = dma.done.wait (%p4775_p12), %s539_s7, 256  }
  0x58   : > { %4495 = vsyncadd (%p4775_p12), %s539_s7, 4294967040 }
  0x59   : > { %4497 = dma.done.wait (%p56_p1), [#allocation6], 144  }
  0x5a   : > { %4499 = vsyncadd (%p56_p1), [#allocation6], 4294967152 }
  0x5b   : > { %4501 = dma.done.wait (%p56_p1), [#allocation9], 256  }
  0x5c   : > { %4503 = vsyncadd (%p56_p1), [#allocation9], 4294967040 }
  0x5d   : > { %4505 = dma.done.wait (%p56_p1), [#allocation12], 3072  }
  0x5e   : > { %4507 = vsyncadd (%p56_p1), [#allocation12], 4294964224 }
  0x5f   : > { %4509 = dma.done.wait (%p56_p1), [#allocation15], 3072  }
  0x60   : > { %4511 = vsyncadd (%p56_p1), [#allocation15], 4294964224 }
  0x61   : > { %4513 = dma.done.wait (%p56_p1), [#allocation18], 6144  }
  0x62   : > { %4515 = vsyncadd (%p56_p1), [#allocation18], 4294961152 }
  0x63   : > { %4517 = dma.done.wait (%p56_p1), [#allocation21], 3072  }
  0x64   : > { %4519 = vsyncadd (%p56_p1), [#allocation21], 4294964224  ;;  %v4850_v0 = vld [vmem:[%s4819_s17] sm:$0xff]  ;;  %v4855_v6 = vld [vmem:[%s4819_s17 + $0x8] sm:$0xff]  ;;  %v4557_v23 = vmov 128.0   ;;  %s4558_s3 = smov 32  }
  0x65   : > { %v3611_v1 = vld [vmem:[#allocation11 + $0x38] sm:$0xff]  ;;  %v645_v2 = vmul.f32 %v4850_v0, %v4850_v0  ;;  %v3610_v7 = vld [vmem:[#allocation11 + $0x30] sm:$0xff]  ;;  %v646_v8 = vmul.f32 %v4855_v6, %v4855_v6  ;;  %v3609_v12 = vld [vmem:[#allocation11 + $0x28] sm:$0xff]  ;;  %3988 = vrcp.f32 %v4557_v23  ;;  %s4559_s16 = smov 96   ;;  %s4560_s29 = smov 64   ;;  %vm1034_vm7 = vcmask 261120  }
  0x66   : > { %v3619_v3 = vld [vmem:[#allocation11 + $0x78] sm:$0xff]  ;;  %818 = vmatpush.bf16.xpose.msra.mxu0 %v3611_v1  ;;  %v3618_v9 = vld [vmem:[#allocation11 + $0x70] sm:$0xff]  ;;  %v3617_v13 = vld [vmem:[#allocation11 + $0x68] sm:$0xff]  ;;  %s4561_s22 = smov 127   ;;  %s4562_s23 = smov 1   ;;  %vm1037_vm8 = vcmask 523264  }
  0x67   : > { %v3627_v4 = vld [vmem:[#allocation13 + $0x38] sm:$0xff]  ;;  %647 = vadd.xlane.f32.xlu0 %v645_v2  ;;  %832 = vmatpush.bf16.xpose.msra.mxu1 %v3619_v3  ;;  %v3626_v10 = vld [vmem:[#allocation13 + $0x30] sm:$0xff]  ;;  %v3625_v14 = vld [vmem:[#allocation13 + $0x28] sm:$0xff]  ;;  %vm1107_vm9 = vcmask 1039360   ;;  %vm1040_vm10 = vcmask 785408   ;;  %vm1128_vm11 = vcmask 7168  }
  0x68   : > { %v3635_v5 = vld [vmem:[#allocation14 + $0x38] sm:$0xff]  ;;  %910 = vmatpush.bf16.xpose.msra.mxu2 %v3627_v4  ;;  %v3634_v11 = vld [vmem:[#allocation14 + $0x30] sm:$0xff]  ;;  %v3633_v15 = vld [vmem:[#allocation14 + $0x28] sm:$0xff]  ;;  %vm1236_vm13 = vcmask 130048   ;;  %s3724_s18 = sshll.u32 %s4660_s15, 4  ;;  %s640_s1 = scalar_lea.vmem [#allocation22], %s3089_s5 }
  0x69   : > { %988 = vmatpush.bf16.xpose.msra.mxu3 %v3635_v5  ;;  %v3608_v16 = vld [vmem:[#allocation11 + $0x20] sm:$0xff]  ;;  %v3607_v20 = vld [vmem:[#allocation11 + $0x18] sm:$0xff]  ;;  %v3606_v26 = vld [vmem:[#allocation11 + $0x10] sm:$0xff]  ;;  %s5592_s7 = sld [smem:[#allocation37_spill]]  ;;  %s2878_s15 = scalar_lea.sflag [#allocation4], %s4813_s24 }
  0x6a   : > { %v3616_v17 = vld [vmem:[#allocation11 + $0x60] sm:$0xff]  ;;  %v3615_v21 = vld [vmem:[#allocation11 + $0x58] sm:$0xff]  ;;  %v3614_v27 = vld [vmem:[#allocation11 + $0x50] sm:$0xff] }
  0x6b   : > { %v3624_v18 = vld [vmem:[#allocation13 + $0x20] sm:$0xff]  ;;  %v3623_v22 = vld [vmem:[#allocation13 + $0x18] sm:$0xff]  ;;  %v3989_v25 = vpop.eup %3988  ;;  %v3622_v28 = vld [vmem:[#allocation13 + $0x10] sm:$0xff] }
  0x6c   : > { %v3632_v19 = vld [vmem:[#allocation14 + $0x20] sm:$0xff]  ;;  %v3631_v24 = vld [vmem:[#allocation14 + $0x18] sm:$0xff]  ;;  %v3630_v29 = vld [vmem:[#allocation14 + $0x10] sm:$0xff]  ;;  %v652_v30 = vmul.f32 128.0, %v3989_v25  ;;  %vm656_vm0 = vweird.f32 %v3989_v25 }
  0x6d   : > { %v3605_v32 = vld [vmem:[#allocation11 + $0x8] sm:$0xff]  ;;  %v3604_v38 = vld [vmem:[#allocation11] sm:$0xff]  ;;  %v4866_v50 = vld [vmem:[#allocation10] sm:$0xff]  }
  0x6e   : > { %819 = vmatpush.bf16.xpose.msra.mxu0 %v3610_v7  ;;  %v653_v31 = vsub.f32 1.0, %v652_v30  ;;  %v3613_v33 = vld [vmem:[#allocation11 + $0x48] sm:$0xff]  ;;  %v3612_v39 = vld [vmem:[#allocation11 + $0x40] sm:$0xff]  ;;  %v3735_v55 = vunpack.c.l.bf16 %v4866_v50  ;;  %v3736_v56 = vunpack.c.h.bf16 %v4866_v50  ;;  %v4882_v61 = vld [vmem:[#allocation8] sm:$0xff]  }
  0x6f   : > { %649 = vadd.xlane.f32.xlu0 %v646_v8  ;;  %833 = vmatpush.bf16.xpose.msra.mxu1 %v3618_v9  ;;  %v3621_v34 = vld [vmem:[#allocation13 + $0x8] sm:$0xff]  ;;  %v3620_v40 = vld [vmem:[#allocation13] sm:$0xff]  ;;  %v3731_v1 = vunpack.c.l.bf16 %v4882_v61  ;;  %v3732_v2 = vunpack.c.h.bf16 %v4882_v61  ;;  %s4468_s4 = scalar_lea.hbm %s5592_s7, 32 }
  0x70   : > { %911 = vmatpush.bf16.xpose.msra.mxu2 %v3626_v10  ;;  %v3629_v35 = vld [vmem:[#allocation14 + $0x8] sm:$0xff]  ;;  %v654_v36 = vmul.f32 %v3989_v25, %v653_v31  ;;  %v3628_v41 = vld [vmem:[#allocation14] sm:$0xff]  ;;  %v3916_v59 = vpack.i.bf16 %v3736_v56, %v3735_v55 }
  0x71   : > { %989 = vmatpush.bf16.xpose.msra.mxu3 %v3634_v11  ;;  %v4862_v46 = vld [vmem:[#allocation7] sm:$0xff]   ;;  %v3936_v7 = vpack.i.bf16 %v3732_v2, %v3731_v1 }
  0x72   : > { %v655_v37 = vadd.f32 %v3989_v25, %v654_v36  ;;  %v3727_v47 = vunpack.c.l.bf16 %v4862_v46  ;;  %v3728_v48 = vunpack.c.h.bf16 %v4862_v46 }
  0x74   : > { %v4859_v42 = vsel %vm656_vm0, %v3989_v25, %v655_v37  ;;  %v3911_v52 = vpack.i.bf16 %v3728_v48, %v3727_v47 }
  0x76   : > { %820 = vmatpush.bf16.xpose.msra.mxu0 %v3609_v12  ;;  %3912 = vrot.lane.b32.xlu1 %v3911_v52, %s4558_s3 }
  0x77   : > { %834 = vmatpush.bf16.xpose.msra.mxu1 %v3617_v13  ;;  %3922 = vrot.lane.b32.xlu2 %v3911_v52, %s4560_s29  ;;  %v3986_v13 = vld [vmem:[#allocation5] ss:$0 sm:$0xff] }
  0x78   : > { %912 = vmatpush.bf16.xpose.msra.mxu2 %v3625_v14 }
  0x79   : > { %990 = vmatpush.bf16.xpose.msra.mxu3 %v3633_v15 }
  0x7e   : > { %821 = vmatpush.bf16.xpose.msra.mxu0 %v3608_v16  ;;  %3917 = vrot.lane.b32.xlu1 %v3916_v59, %s4558_s3 }
  0x7f   : > { %835 = vmatpush.bf16.xpose.msra.mxu1 %v3616_v17  ;;  %3927 = vrot.lane.b32.xlu2 %v3916_v59, %s4560_s29 }
  0x80   : > { %913 = vmatpush.bf16.xpose.msra.mxu2 %v3624_v18 }
  0x81   : > { %991 = vmatpush.bf16.xpose.msra.mxu3 %v3632_v19 }
  0x83   : > { %3932 = vrot.lane.b32.xlu0 %v3911_v52, %s4559_s16 }
  0x86   : > { %822 = vmatpush.bf16.xpose.msra.mxu0 %v3607_v20  ;;  %3937 = vrot.lane.b32.xlu1 %v3936_v7, %s4558_s3 }
  0x87   : > { %836 = vmatpush.bf16.xpose.msra.mxu1 %v3615_v21  ;;  %3942 = vrot.lane.b32.xlu2 %v3916_v59, %s4559_s16 }
  0x88   : > { %914 = vmatpush.bf16.xpose.msra.mxu2 %v3623_v22 }
  0x89   : > { %992 = vmatpush.bf16.xpose.msra.mxu3 %v3631_v24 }
  0x8e   : > { %823 = vmatpush.bf16.xpose.msra.mxu0 %v3606_v26  ;;  %3947 = vrot.lane.b32.xlu1 %v3936_v7, %s4560_s29 }
  0x8f   : > { %837 = vmatpush.bf16.xpose.msra.mxu1 %v3614_v27  ;;  %3952 = vrot.lane.b32.xlu2 %v3936_v7, %s4559_s16 }
  0x90   : > { %915 = vmatpush.bf16.xpose.msra.mxu2 %v3622_v28 }
  0x91   : > { %993 = vmatpush.bf16.xpose.msra.mxu3 %v3630_v29 }
  0x96   : > { %824 = vmatpush.bf16.xpose.msra.mxu0 %v3605_v32 }
  0x97   : > { %838 = vmatpush.bf16.xpose.msra.mxu1 %v3613_v33 }
  0x98   : > { %916 = vmatpush.bf16.xpose.msra.mxu2 %v3621_v34 }
  0x99   : > { %994 = vmatpush.bf16.xpose.msra.mxu3 %v3629_v35 }
  0x9e   : > { %825 = vmatpush.bf16.xpose.msra.mxu0 %v3604_v38 }
  0x9f   : > { %839 = vmatpush.bf16.xpose.msra.mxu1 %v3612_v39 }
  0xa0   : > { %917 = vmatpush.bf16.xpose.msra.mxu2 %v3620_v40 }
  0xa1   : > { %995 = vmatpush.bf16.xpose.msra.mxu3 %v3628_v41 }
  0xd1   : > { %v4926_v30 = vpop.permute.xlu2 %3922 }
  0xd9   : > { %v4928_v31 = vpop.permute.xlu2 %3927 }
  0xda   : > { %v648_v43 = vpop.xlane.xlu0 %647 }
  0xdb   : > { %v658_v44 = vmul.f32 %v4859_v42, %v648_v43  ;;  %v3924_v43 = vunpack.i.l.bf16 %v4926_v30 }
  0xdd   : > { %v660_v45 = vadd.f32 1.1920929e-07, %v658_v44  ;;  %v3929_v44 = vunpack.i.l.bf16 %v4928_v31 }
  0xdf   : > { %3990 = vrsqrt.f32 %v660_v45  ;;  %vm668_vm2 = vweird.f32 %v660_v45 }
  0xe1   : > { %v4930_v32 = vpop.permute.xlu2 %3942 }
  0xe2   : > { %v650_v49 = vpop.xlane.xlu0 %649 }
  0xe3   : > { %v659_v51 = vmul.f32 %v4859_v42, %v650_v49 }
  0xe5   : > { %v3991_v53 = vpop.eup %3990  ;;  %v661_v54 = vadd.f32 1.1920929e-07, %v659_v51 }
  0xe6   : > { %v663_v57 = vmul.f32 %v3991_v53, %v660_v45  ;;  %vm669_vm1 = vweird.f32 %v3991_v53 }
  0xe7   : > { %3992 = vrsqrt.f32 %v661_v54  ;;  %vm670_vm3 = vmor %vm668_vm2, %vm669_vm1  ;;  %vm678_vm5 = vweird.f32 %v661_v54 }
  0xe8   : > { %v664_v58 = vmul.f32 %v3991_v53, %v663_v57  ;;  %v3913_v34 = vpop.permute.xlu1 %3912 }
  0xe9   : > { %v4932_v33 = vpop.permute.xlu2 %3952  ;;  %v3914_v40 = vunpack.i.l.bf16 %v3913_v34 }
  0xea   : > { %v665_v60 = vmul.f32 0.5, %v664_v58  ;;  %v3944_v58 = vunpack.i.l.bf16 %v4930_v32 }
  0xeb   : > { %v1035_v49 = vsel %vm1034_vm7, %v3727_v47, %v3914_v40 }
  0xec   : > { %v666_v62 = vsub.f32 1.5, %v665_v60  ;;  %v1038_v59 = vsel %vm1037_vm8, %v1035_v49, %v3924_v43 }
  0xed   : > { %v3993_v63 = vpop.eup %3992 }
  0xee   : > { %v673_v3 = vmul.f32 %v3993_v63, %v661_v54  ;;  %v667_v4 = vmul.f32 %v3991_v53, %v666_v62  ;;  %vm679_vm4 = vweird.f32 %v3993_v63 }
  0xef   : > { %vm680_vm6 = vmor %vm678_vm5, %vm679_vm4 }
  0xf0   : > { %v674_v5 = vmul.f32 %v3993_v63, %v673_v3  ;;  %v671_v9 = vsel %vm670_vm3, %v3991_v53, %v667_v4  ;;  %v3918_v36 = vpop.permute.xlu1 %3917  ;;  %v3954_v4 = vunpack.i.l.bf16 %v4932_v33 }
  0xf1   : > { %v682_v12 = vmul.f32 %v671_v9, %v4850_v0  ;;  %v3919_v41 = vunpack.i.l.bf16 %v3918_v36 }
  0xf2   : > { %v675_v8 = vmul.f32 0.5, %v674_v5 }
  0xf3   : > { %v687_v16 = vmul.f32 %v3986_v13, %v682_v12  ;;  %v1089_v51 = vsel %vm1034_vm7, %v3735_v55, %v3919_v41  ;;  %v3925_v41 = vunpack.i.h.bf16 %v4926_v30 }
  0xf4   : > { %v676_v10 = vsub.f32 1.5, %v675_v8  ;;  %v1091_v60 = vsel %vm1037_vm8, %v1089_v51, %v3929_v44  ;;  %v3945_v44 = vunpack.i.h.bf16 %v4930_v32 }
  0xf5   : > { %v4934_v39 = vpop.permute.xlu0 %3932  ;;  %v1093_v5 = vsel %vm1040_vm10, %v1091_v60, %v3944_v58 }
  0xf6   : > { %v677_v11 = vmul.f32 %v3993_v63, %v676_v10  ;;  %v3934_v57 = vunpack.i.l.bf16 %v4934_v39 }
  0xf8   : > { %v681_v14 = vsel %vm680_vm6, %v3993_v63, %v677_v11  ;;  %v3938_v38 = vpop.permute.xlu1 %3937  ;;  %v1041_v3 = vsel %vm1040_vm10, %v1038_v59, %v3934_v57 }
  0xf9   : > { %v683_v15 = vmul.f32 %v681_v14, %v4855_v6  ;;  %v3939_v52 = vunpack.i.l.bf16 %v3938_v38  ;;  %v3940_v40 = vunpack.i.h.bf16 %v3938_v38 }
  0xfb   : > { %v688_v17 = vmul.f32 %v3986_v13, %v683_v15  ;;  %v1063_v47 = vsel %vm1034_vm7, %v3731_v1, %v3939_v52  ;;  %v3935_v52 = vunpack.i.h.bf16 %v4934_v39  ;;  %v1064_v50 = vsel %vm1034_vm7, %v3732_v2, %v3940_v40 }
  0xfc   : > { %v4563_v40 = vmov -1e+30  }
  0xfd   : > { %v689_v18 = vpack.c.bf16 %v688_v17, %v687_v16 }
  0xff   : > { %826 = vmatmul.bf16.vlgmr.msra.gmra.mxu0 %v689_v18  ;;  %840 = vmatmul.bf16.vlgmr.msra.gmra.mxu1 %v689_v18 }
 0x100   : > { %918 = vmatmul.bf16.vlgmr.msra.gmra.mxu2 %v689_v18  ;;  %996 = vmatmul.bf16.vlgmr.msra.gmra.mxu3 %v689_v18  ;;  %v3948_v53 = vpop.permute.xlu1 %3947 }
 0x101   : > { %v3949_v62 = vunpack.i.l.bf16 %v3948_v53 }
 0x103   : > { %v1065_v7 = vsel %vm1037_vm8, %v1063_v47, %v3949_v62 }
 0x104   : > { %v1067_v14 = vsel %vm1040_vm10, %v1065_v7, %v3954_v4 }
 0x17c   : > { %v4898_v19 = vpop.f32.mrf.mxu0  ;;  %v4900_v20 = vpop.f32.mrf.mxu1 }
 0x17d   : > { %1101 = vrot.lane.b32.xlu0 %v4900_v20, %s4561_s22  ;;  %1099 = vrot.lane.b32.xlu2 %v4898_v19, %s4561_s22  ;;  %v1137_v10 = vmul.f32 %v1041_v3, %v4898_v19  ;;  %v1138_v11 = vmul.f32 %v1041_v3, %v4900_v20 }
 0x183   : > { %v4904_v0 = vpop.f32.mrf.mxu2  ;;  %v997_v6 = vpop.f32.mrf.mxu3 }
 0x184   : > { %v4906_v21 = vpop.f32.mrf.mxu0  ;;  %v1185_v22 = vpack.c.bf16 %v997_v6, %v997_v6  ;;  %v4911_v24 = vpop.f32.mrf.mxu1  ;;  %v1171_v46 = vmul.f32 %v1041_v3, %v4904_v0 }
 0x185   : > { %1118 = vrot.lane.b32.xlu0 %v4900_v20, %s4562_s23  ;;  %1159 = vrot.lane.b32.xlu2 %v4904_v0, %s4561_s22 }
 0x186   : > { %1103 = vrot.lane.b32.xlu1 %v4906_v21, %s4561_s22  ;;  %v1337_v27 = vunpack.c.l.b16 %v1185_v22 }
 0x18b   : > { %v999_v23 = vpop.f32.mrf.mxu3  ;;  %v4913_v26 = vpop.f32.mrf.mxu2 }
 0x18c   : > { %v1186_v25 = vpack.c.bf16 %v999_v23, %v999_v23  ;;  %v3920_v23 = vunpack.i.h.bf16 %v3918_v36 }
 0x18d   : > { %1165 = vrot.lane.b32.xlu0 %v4904_v0, %s4562_s23  ;;  %1105 = vrot.lane.b32.xlu2 %v4911_v24, %s4561_s22 }
 0x18e   : > { %v1338_v28 = vunpack.c.l.b16 %v1186_v25  ;;  %1161 = vrot.lane.b32.xlu1 %v4913_v26, %s4561_s22 }
 0x190   : > { %v4918_v29 = vpack.c.b16 %v1338_v28, %v1337_v27  ;;  %v3915_v28 = vunpack.i.h.bf16 %v3913_v34  ;;  %v3950_v34 = vunpack.i.h.bf16 %v3948_v53 }
 0x192   : > { %1354 = vmatpush.bf16.msrb.mxu0 %v4918_v29  ;;  %3737 = vmatpush.bf16.msrb.mxu1 %v4918_v29  ;;  %v1036_v43 = vsel %vm1034_vm7, %v3728_v48, %v3915_v28  ;;  %v3955_v48 = vunpack.i.h.bf16 %v4932_v33  ;;  %v1066_v53 = vsel %vm1037_vm8, %v1064_v50, %v3950_v34 }
 0x194   : > { %v1068_v2 = vsel %vm1040_vm10, %v1066_v53, %v3955_v48 }
 0x195   : > { %1124 = vrot.lane.b32.xlu2 %v4898_v19, %s4562_s23  ;;  %1126 = vrot.lane.b32.xlu0 %v4906_v21, %s4562_s23  ;;  %v3930_v19 = vunpack.i.h.bf16 %v4928_v31 }
 0x196   : > { %1167 = vrot.lane.b32.xlu1 %v4913_v26, %s4562_s23 }
 0x19e   : > { %1120 = vrot.lane.b32.xlu1 %v4911_v24, %s4562_s23 }
 0x1d7   : > { %v1100_v35 = vpop.permute.xlu2 %1099 }
 0x1df   : > { %v1160_v37 = vpop.permute.xlu2 %1159 }
 0x1e0   : > { %v1173_v51 = vmul.f32 %v1160_v37, %v1093_v5 }
 0x1e2   : > { %v1175_v38 = vadd.f32 %v1173_v51, %v1171_v46 }
 0x1e7   : > { %v4938_v45 = vpop.permute.xlu2 %1105 }
 0x1ef   : > { %v1102_v54 = vpop.permute.xlu0 %1101  ;;  %v1125_v1 = vpop.permute.xlu2 %1124 }
 0x1f0   : > { %v1108_v55 = vsel %vm1107_vm9, %v1100_v35, %v1102_v54  ;;  %v1116_v63 = vsel %vm1107_vm9, %v1102_v54, %v1100_v35  ;;  %v1090_v35 = vsel %vm1034_vm7, %v3736_v56, %v3920_v23  ;;  %v1039_v56 = vsel %vm1037_vm8, %v1036_v43, %v3925_v41 }
 0x1f1   : > { %v1141_v8 = vmul.f32 %v1108_v55, %v1093_v5  ;;  %v1142_v9 = vmul.f32 %v1116_v63, %v1093_v5  ;;  %v1092_v31 = vsel %vm1037_vm8, %v1090_v35, %v3930_v19  ;;  %v1042_v54 = vsel %vm1040_vm10, %v1039_v56, %v3935_v52 }
 0x1f2   : > { %v1094_v32 = vsel %vm1040_vm10, %v1092_v31, %v3945_v44  ;;  %v1172_v39 = vmul.f32 %v1042_v54, %v4913_v26  ;;  %v1139_v26 = vmul.f32 %v1042_v54, %v4906_v21  ;;  %v1140_v5 = vmul.f32 %v1042_v54, %v4911_v24 }
 0x1f3   : > { %v1145_v17 = vadd.f32 %v1141_v8, %v1137_v10  ;;  %v1146_v18 = vadd.f32 %v1142_v9, %v1138_v11 }
 0x1f7   : > { %v1119_v12 = vpop.permute.xlu0 %1118 }
 0x1f8   : > { %v1104_v13 = vpop.permute.xlu1 %1103  ;;  %v1129_v15 = vsel %vm1128_vm11, %v1125_v1, %v1119_v12  ;;  %v1135_v16 = vsel %vm1128_vm11, %v1119_v12, %v1125_v1 }
 0x1f9   : > { %v1149_v6 = vmul.f32 %v1135_v16, %v1067_v14  ;;  %v1150_v22 = vmul.f32 %v1129_v15, %v1067_v14  ;;  %v1109_v0 = vsel %vm1107_vm9, %v1104_v13, %v4938_v45  ;;  %v1117_v33 = vsel %vm1107_vm9, %v4938_v45, %v1104_v13 }
 0x1fa   : > { %v1143_v55 = vmul.f32 %v1109_v0, %v1094_v32  ;;  %v1144_v63 = vmul.f32 %v1117_v33, %v1094_v32 }
 0x1fb   : > { %v1153_v25 = vadd.f32 %v1149_v6, %v1145_v17  ;;  %v1154_v27 = vadd.f32 %v1150_v22, %v1146_v18 }
 0x1fc   : > { %v1147_v45 = vadd.f32 %v1143_v55, %v1139_v26  ;;  %v1148_v1 = vadd.f32 %v1144_v63, %v1140_v5 }
 0x1fd   : > { %v1181_v20 = vpack.c.bf16 %v1154_v27, %v1153_v25  ;;  %v1187_v27 = vlaneseq }
 0x1ff   : > { %v1166_v49 = vpop.permute.xlu0 %1165  ;;  %v1526_v24 = vunpack.c.h.b16 %v1181_v20  ;;  %v1198_v18 = vunpack.c.l.b16 %v1181_v20  ;;  %v1188_v19 = vshrl.u32 %v1187_v27, 7  ;;  %v1191_v20 = vand.u32 127, %v1187_v27 }
 0x200   : > { %v1162_v36 = vpop.permute.xlu1 %1161  ;;  %v1177_v30 = vmul.f32 %v1166_v49, %v1067_v14 }
 0x201   : > { %v1174_v37 = vmul.f32 %v1162_v36, %v1094_v32  ;;  %vm1192_vm12 = vcmp.ge.s32.totalorder %v1188_v19, %v1191_v20  ;;  %v1189_v44 = vadd.s32 8, %v1188_v19 }
 0x202   : > { %v1179_v61 = vadd.f32 %v1177_v30, %v1175_v38  ;;  %v5007_v41 = vsel %vm1192_vm12, 0.0, %v4563_v40 }
 0x203   : > { %v1176_v58 = vadd.f32 %v1174_v37, %v1172_v39  ;;  %vm1193_vm14 = vcmp.ge.s32.totalorder %v1189_v44, %v1191_v20 }
 0x204   : > { %v1183_v60 = vpack.c.bf16 %v1179_v61, %v1179_v61  ;;  %v5012_v34 = vsel %vm1193_vm14, 0.0, %v4563_v40 }
 0x206   : > { %v1205_v3 = vunpack.c.l.b16 %v1183_v60 }
 0x207   : > { %v1127_v7 = vpop.permute.xlu0 %1126 }
 0x208   : > { %v1168_v57 = vpop.permute.xlu1 %1167 }
 0x209   : > { %v1178_v59 = vmul.f32 %v1168_v57, %v1068_v2 }
 0x20b   : > { %v1180_v62 = vadd.f32 %v1178_v59, %v1176_v58 }
 0x20d   : > { %v1184_v47 = vpack.c.bf16 %v1180_v62, %v1180_v62 }
 0x20f   : > { %v1206_v4 = vunpack.c.l.b16 %v1184_v47 }
 0x210   : > { %v1121_v8 = vpop.permute.xlu1 %1120 }
 0x211   : > { %v4992_v9 = vpack.c.b16 %v1206_v4, %v1205_v3  ;;  %v1130_v10 = vsel %vm1128_vm11, %v1127_v7, %v1121_v8  ;;  %v1136_v11 = vsel %vm1128_vm11, %v1121_v8, %v1127_v7 }
 0x212   : > { %v1151_v12 = vmul.f32 %v1136_v11, %v1068_v2  ;;  %v1152_v13 = vmul.f32 %v1130_v10, %v1068_v2 }
 0x213   : > { %v1215_v14 = vsel %vm1034_vm7, %v4992_v9, 0 }
 0x214   : > { %v1155_v15 = vadd.f32 %v1151_v12, %v1147_v45  ;;  %v1156_v16 = vadd.f32 %v1152_v13, %v1148_v1  ;;  %1224 = vmatpush.bf16.xpose.msrb.mxu3 %v1215_v14 }
 0x216   : > { %v1182_v21 = vpack.c.bf16 %v1156_v16, %v1155_v15 }
 0x218   : > { %v1527_v17 = vunpack.c.h.b16 %v1182_v21  ;;  %v1199_v6 = vunpack.c.l.b16 %v1182_v21 }
 0x21a   : > { %v1200_v22 = vpack.c.b16 %v1199_v6, %v1198_v18  ;;  %v4998_v23 = vpack.c.b16 %v1527_v17, %v1526_v24 }
 0x21c   : > { %1201 = vrot.lane.b32.xlu0 %v1200_v22, %s4559_s16  ;;  %3230 = vmatmul.msk.bf16.vlgmr.msrb.gmra.mxu3 %vm1034_vm7, %v1200_v22 }
 0x224   : > { %1370 = vrot.lane.b32.xlu0 %v4992_v9, %s4559_s16 }
 0x22c   : > { %1366 = vrot.lane.b32.xlu0 %v1200_v22, %s4560_s29 }
 0x28e   : > { %v1202_v25 = vpop.permute.xlu0 %1201 }
 0x28f   : > { %3231 = vmatmul.msk.bf16.gmra.mxu3 %vm1034_vm7, %v1202_v25 }
 0x296   : > { %v1371_v28 = vpop.permute.xlu0 %1370 }
 0x297   : > { %v1379_v35 = vsel %vm1034_vm7, %v1371_v28, 0 }
 0x298   : > { %1388 = vmatpush.bf16.xpose.msrb.mxu2 %v1379_v35  ;;  %3738 = vmatpush.bf16.xpose.msra.mxu3 %v1379_v35 }
 0x29e   : > { %v1367_v43 = vpop.permute.xlu0 %1366 }
 0x29f   : > { %v1226_v36 = vpop.f32.mrf.mxu3  ;;  %3234 = vmatmul.msk.bf16.vlgmr.msrb.gmra.mxu2 %vm1034_vm7, %v1367_v43 }
 0x2a0   : > { %v1227_v49 = vadd.f32 %v1226_v36, %v5007_v41 }
 0x2a2   : > { %v1237_v51 = vsel %vm1236_vm13, %v1227_v49, -inf }
 0x2a3   : > { %1238 = vmax.xlane.f32.xlu1 %v1237_v51 }
 0x2a7   : > { %v1228_v31 = vpop.f32.mrf.mxu3 }
 0x2a8   : > { %v1229_v52 = vadd.f32 %v1228_v31, %v5012_v34 }
 0x2aa   : > { %v1240_v50 = vsel %vm1236_vm13, %v1229_v52, -inf }
 0x2ab   : > { %1241 = vmax.xlane.f32.xlu2 %v1240_v50 }
 0x2bc   : > { %1368 = vrot.lane.b32.xlu1 %v1202_v25, %s4560_s29 }
 0x2c4   : > { %1687 = vrot.lane.b32.xlu1 %v4998_v23, %s4560_s29 }
 0x2cc   : > { %1529 = vrot.lane.b32.xlu1 %v4998_v23, %s4559_s16 }
 0x312   : > { %v1231_v59 = vpop.f32.mrf.mxu3 }
 0x313   : > { %v5036_v33 = vadd.f32 %v1231_v59, %v5007_v41 }
 0x315   : > { %v1243_v60 = vsel %vm1236_vm13, %v5036_v33, -inf }
 0x316   : > { %v1239_v56 = vpop.xlane.xlu1 %1238 }
 0x317   : > { %v1249_v46 = vsub.f32 %v1227_v49, %v1239_v56 }
 0x319   : > { %v1253_v30 = vmul.f32 1.442695, %v1249_v46 }
 0x31a   : > { %v1233_v55 = vpop.f32.mrf.mxu3 }
 0x31b   : > { %3994 = vpow2.f32 %v1253_v30  ;;  %v5052_v63 = vadd.f32 %v1233_v55, %v5012_v34 }
 0x31d   : > { %v1246_v3 = vsel %vm1236_vm13, %v5052_v63, -inf }
 0x31e   : > { %v1242_v48 = vpop.xlane.xlu2 %1241 }
 0x31f   : > { %v1250_v32 = vsub.f32 %v1229_v52, %v1242_v48 }
 0x321   : > { %v5021_v38 = vpop.eup %3994  ;;  %v1255_v37 = vmul.f32 1.442695, %v1250_v32 }
 0x322   : > { %v1390_v53 = vpop.f32.mrf.mxu2  ;;  %v1261_v54 = vsel %vm1236_vm13, %v5021_v38, 0.0 }
 0x323   : > { %3996 = vpow2.f32 %v1255_v37  ;;  %1262 = vadd.xlane.f32.xlu0 %v1261_v54  ;;  %v5047_v62 = vadd.f32 %v1390_v53, %v5007_v41 }
 0x325   : > { %v1400_v47 = vsel %vm1236_vm13, %v5047_v62, -inf }
 0x329   : > { %v5025_v39 = vpop.eup %3996 }
 0x32a   : > { %v1392_v61 = vpop.f32.mrf.mxu2  ;;  %v1264_v2 = vsel %vm1236_vm13, %v5025_v39, 0.0 }
 0x32b   : > { %v5030_v57 = vadd.f32 %v1392_v61, %v5012_v34  ;;  %1265 = vadd.xlane.f32.xlu2 %v1264_v2 }
 0x32d   : > { %v1403_v58 = vsel %vm1236_vm13, %v5030_v57, -inf }
 0x32e   : > { %1404 = vmax.xlane.f32.xlu1 %v1403_v58  ;;  %v1369_v0 = vpop.permute.xlu1 %1368 }
 0x32f   : > { %3235 = vmatmul.msk.bf16.vlgmr.msra.gmra.mxu3 %vm1034_vm7, %v1369_v0 }
 0x336   : > { %1244 = vmax.xlane.f32.xlu1 %v1243_v60  ;;  %v1688_v20 = vpop.permute.xlu1 %1687 }
 0x337   : > { %1531 = vrot.lane.b32.xlu0 %v4992_v9, %s4560_s29 }
 0x33e   : > { %v1530_v51 = vpop.permute.xlu1 %1529 }
 0x343   : > { %1691 = vrot.lane.b32.xlu2 %v4992_v9, %s4558_s3 }
 0x34b   : > { %1689 = vrot.lane.b32.xlu2 %v4998_v23, %s4558_s3 }
 0x374   : > { %1401 = vmax.xlane.f32.xlu2 %v1400_v47 }
 0x37c   : > { %1247 = vmax.xlane.f32.xlu2 %v1246_v3 }
 0x396   : > { %v1263_v4 = vpop.xlane.xlu0 %1262 }
 0x397   : > { %3998 = vrcp.f32 %v1263_v4  ;;  %v1284_v12 = vand.u32 2147483648, %v1263_v4  ;;  %vm1278_vm0 = vweird.f32 %v1263_v4  ;;  %v1282_v14 = vand.u32 2147483647, %v1263_v4 }
 0x399   : > { %v1285_v25 = vor.u32 1.1754944e-38, %v1284_v12  ;;  %vm1283_vm3 = vcmp.eq.f32.partialorder %v1282_v14, 8.507059e+37 }
 0x39d   : > { %v3999_v26 = vpop.eup %3998 }
 0x39e   : > { %v1274_v5 = vmul.f32 %v3999_v26, %v1263_v4  ;;  %v1266_v7 = vpop.xlane.xlu2 %1265  ;;  %vm1279_vm15 = vweird.f32 %v3999_v26 }
 0x39f   : > { %4000 = vrcp.f32 %v1266_v7  ;;  %vm5057_vm1 = vmor %vm1278_vm0, %vm1279_vm15  ;;  %v1297_v21 = vand.u32 2147483647, %v1266_v7  ;;  %v1299_v24 = vand.u32 2147483648, %v1266_v7  ;;  %vm1293_vm4 = vweird.f32 %v1266_v7 }
 0x3a0   : > { %v1275_v8 = vsub.f32 1.0, %v1274_v5 }
 0x3a1   : > { %v1300_v28 = vor.u32 1.1754944e-38, %v1299_v24  ;;  %vm1298_vm6 = vcmp.eq.f32.partialorder %v1297_v21, 8.507059e+37  ;;  %v1405_v37 = vpop.xlane.xlu1 %1404 }
 0x3a2   : > { %v1276_v9 = vmul.f32 %v3999_v26, %v1275_v8 }
 0x3a4   : > { %v1277_v11 = vadd.f32 %v3999_v26, %v1276_v9 }
 0x3a5   : > { %v4001_v10 = vpop.eup %4000 }
 0x3a6   : > { %v1289_v45 = vmul.f32 %v4001_v10, %v1266_v7  ;;  %v1692_v1 = vpop.permute.xlu2 %1691  ;;  %v1281_v18 = vsel %vm5057_vm1, %v3999_v26, %v1277_v11  ;;  %vm1294_vm2 = vweird.f32 %v4001_v10 }
 0x3a7   : > { %v1700_v13 = vsel %vm1034_vm7, %v1692_v1, 0  ;;  %vm1295_vm5 = vmor %vm1293_vm4, %vm1294_vm2  ;;  %v1286_v19 = vsel %vm1283_vm3, %v1285_v25, %v1281_v18 }
 0x3a8   : > { %v1290_v15 = vsub.f32 1.0, %v1289_v45  ;;  %1709 = vmatpush.bf16.xpose.msra.mxu2 %v1700_v13  ;;  %v1287_v43 = vmul.f32 %v5021_v38, %v1286_v19 }
 0x3a9   : > { %v1532_v17 = vpop.permute.xlu0 %1531 }
 0x3aa   : > { %v1291_v6 = vmul.f32 %v4001_v10, %v1290_v15  ;;  %v1540_v22 = vsel %vm1034_vm7, %v1532_v17, 0  ;;  %v1245_v15 = vpop.xlane.xlu1 %1244 }
 0x3ab   : > { %1549 = vmatpush.bf16.xpose.msra.mxu0 %v1540_v22  ;;  %v1251_v18 = vsub.f32 %v5036_v33, %v1245_v15 }
 0x3ac   : > { %v1292_v27 = vadd.f32 %v4001_v10, %v1291_v6 }
 0x3ad   : > { %v1257_v22 = vmul.f32 1.442695, %v1251_v18 }
 0x3ae   : > { %v1296_v35 = vsel %vm1295_vm5, %v4001_v10, %v1292_v27  ;;  %v1690_v49 = vpop.permute.xlu2 %1689 }
 0x3af   : > { %3242 = vmatmul.msk.bf16.vlgmr.msra.gmra.mxu2 %vm1034_vm7, %v1688_v20  ;;  %v1301_v40 = vsel %vm1298_vm6, %v1300_v28, %v1296_v35 }
 0x3b0   : > { %v1302_v44 = vmul.f32 %v5025_v39, %v1301_v40  ;;  %v1413_v39 = vsub.f32 %v5030_v57, %v1405_v37 }
 0x3b2   : > { %v1333_v36 = vpack.c.bf16 %v1302_v44, %v1287_v43  ;;  %v1395_v48 = vpop.f32.mrf.mxu3  ;;  %v1418_v58 = vmul.f32 1.442695, %v1413_v39 }
 0x3b4   : > { %3232 = vmatmul.msk.bf16.vlgmr.msrb.gmra.mxu0 %vm1236_vm13, %v1333_v36 }
 0x3ba   : > { %v1397_v9 = vpop.f32.mrf.mxu3 }
 0x3bb   : > { %v1398_v11 = vadd.f32 %v1397_v9, %v5012_v34 }
 0x3bd   : > { %v1409_v1 = vsel %vm1236_vm13, %v1398_v11, -inf }
 0x3bf   : > { %3243 = vmatmul.msk.bf16.gmra.mxu2 %vm1034_vm7, %v1690_v49 }
 0x3c4   : > { %3238 = vmatmul.msk.bf16.vlgmr.msra.gmra.mxu0 %vm1034_vm7, %v4998_v23  ;;  %v1396_v23 = vadd.f32 %v1395_v48, %v5007_v41 }
 0x3c6   : > { %v1406_v2 = vsel %vm1236_vm13, %v1396_v23, -inf }
 0x3d4   : > { %3239 = vmatmul.msk.bf16.gmra.mxu0 %vm1034_vm7, %v1530_v51 }
 0x3e7   : > { %v1402_v31 = vpop.xlane.xlu2 %1401 }
 0x3e8   : > { %v1412_v46 = vsub.f32 %v5047_v62, %v1402_v31 }
 0x3ea   : > { %v1416_v32 = vmul.f32 1.442695, %v1412_v46 }
 0x3ec   : > { %4002 = vpow2.f32 %v1416_v32 }
 0x3ed   : > { %4004 = vpow2.f32 %v1418_v58 }
 0x3f2   : > { %v5092_v0 = vpop.eup %4002 }
 0x3f3   : > { %v1424_v47 = vsel %vm1236_vm13, %v5092_v0, 0.0  ;;  %v5102_v26 = vpop.eup %4004 }
 0x3f4   : > { %v1427_v10 = vsel %vm1236_vm13, %v5102_v26, 0.0 }
 0x431   : > { %v5072_v52 = vpop.f32.mrf.mxu0 }
 0x432   : > { %v1711_v50 = vpop.f32.mrf.mxu2 }
 0x433   : > { %v5075_v56 = vadd.f32 %v1711_v50, %v5007_v41 }
 0x435   : > { %v1721_v30 = vsel %vm1236_vm13, %v5075_v56, -inf }
 0x436   : > { %1722 = vmax.xlane.f32.xlu0 %v1721_v30 }
 0x439   : > { %v5081_v38 = vpop.f32.mrf.mxu0 }
 0x43a   : > { %v1713_v53 = vpop.f32.mrf.mxu2 }
 0x43b   : > { %v5084_v54 = vadd.f32 %v1713_v53, %v5012_v34 }
 0x43d   : > { %v1724_v61 = vsel %vm1236_vm13, %v5084_v54, -inf }
 0x43e   : > { %1725 = vmax.xlane.f32.xlu1 %v1724_v61  ;;  %1407 = vmax.xlane.f32.xlu0 %v1406_v2 }
 0x441   : > { %v5090_v59 = vpop.f32.mrf.mxu0 }
 0x442   : > { %v1716_v60 = vpop.f32.mrf.mxu2 }
 0x443   : > { %v5095_v62 = vadd.f32 %v1716_v60, %v5007_v41 }
 0x445   : > { %v1727_v57 = vsel %vm1236_vm13, %v5095_v62, -inf }
 0x446   : > { %1728 = vmax.xlane.f32.xlu1 %v1727_v57  ;;  %1425 = vadd.xlane.f32.xlu0 %v1424_v47 }
 0x449   : > { %v1553_v55 = vpop.f32.mrf.mxu0 }
 0x44a   : > { %v1554_v3 = vadd.f32 %v1553_v55, %v5012_v34  ;;  %v1718_v4 = vpop.f32.mrf.mxu2 }
 0x44b   : > { %v5105_v5 = vadd.f32 %v1718_v4, %v5012_v34 }
 0x44c   : > { %v1564_v7 = vsel %vm1236_vm13, %v1554_v3, -inf }
 0x44d   : > { %v1730_v8 = vsel %vm1236_vm13, %v5105_v5, -inf }
 0x44e   : > { %1731 = vmax.xlane.f32.xlu2 %v1730_v8  ;;  %1565 = vmax.xlane.f32.xlu0 %v1564_v7 }
 0x44f   : > { %1428 = vadd.xlane.f32.xlu1 %v1427_v10 }
 0x451   : > { %v5113_v45 = vpop.f32.mrf.mxu0 }
 0x456   : > { %1410 = vmax.xlane.f32.xlu2 %v1409_v1 }
 0x459   : > { %v1558_v12 = vpop.f32.mrf.mxu0 }
 0x45a   : > { %v5117_v13 = vadd.f32 %v1558_v12, %v5012_v34  ;;  %v5126_v34 = vpop.xlane.xlu2 %1247 }
 0x45b   : > { %v1252_v12 = vsub.f32 %v5052_v63, %v5126_v34 }
 0x45c   : > { %v1570_v14 = vsel %vm1236_vm13, %v5117_v13, -inf }
 0x45d   : > { %1571 = vmax.xlane.f32.xlu0 %v1570_v14 }
 0x471   : > { %1498 = vrot.lane.b32.xlu0 %v4918_v29, %s4559_s16 }
 0x4a9   : > { %v1723_v16 = vpop.xlane.xlu0 %1722 }
 0x4aa   : > { %v1733_v28 = vsub.f32 %v5075_v56, %v1723_v16 }
 0x4ac   : > { %v1737_v35 = vmul.f32 1.442695, %v1733_v28 }
 0x4b1   : > { %v1408_v21 = vpop.xlane.xlu0 %1407  ;;  %v5123_v24 = vpop.xlane.xlu1 %1725 }
 0x4b2   : > { %v1414_v17 = vsub.f32 %v1396_v23, %v1408_v21 }
 0x4b4   : > { %v1420_v6 = vmul.f32 1.442695, %v1414_v17  ;;  %v1259_v17 = vmul.f32 1.442695, %v1252_v12 }
 0x4b6   : > { %4006 = vpow2.f32 %v1420_v6  ;;  %v5172_v6 = vadd.f32 %v5113_v45, %v5007_v41 }
 0x4b7   : > { %4008 = vpow2.f32 %v1257_v22 }
 0x4b8   : > { %4010 = vpow2.f32 %v1737_v35  ;;  %v1567_v28 = vsel %vm1236_vm13, %v5172_v6, -inf }
 0x4b9   : > { %v5128_v25 = vpop.xlane.xlu0 %1425  ;;  %v5130_v27 = vpop.xlane.xlu1 %1728 }
 0x4ba   : > { %v1447_v9 = vand.u32 2147483648, %v5128_v25  ;;  %vm1441_vm15 = vweird.f32 %v5128_v25  ;;  %v1445_v10 = vand.u32 2147483647, %v5128_v25 }
 0x4bc   : > { %v5133_v19 = vpop.eup %4006  ;;  %v1448_v16 = vor.u32 1.1754944e-38, %v1447_v9  ;;  %vm1446_vm2 = vcmp.eq.f32.partialorder %v1445_v10, 8.507059e+37 }
 0x4bd   : > { %v1430_v20 = vsel %vm1236_vm13, %v5133_v19, 0.0  ;;  %v5139_v43 = vpop.eup %4008 }
 0x4be   : > { %1431 = vadd.xlane.f32.xlu1 %v1430_v20  ;;  %v1267_v51 = vsel %vm1236_vm13, %v5139_v43, 0.0  ;;  %v5144_v31 = vpop.eup %4010 }
 0x4bf   : > { %v1745_v53 = vsel %vm1236_vm13, %v5144_v31, 0.0 }
 0x4c1   : > { %v5137_v33 = vpop.xlane.xlu2 %1731  ;;  %v1566_v40 = vpop.xlane.xlu0 %1565 }
 0x4c2   : > { %v1574_v44 = vsub.f32 %v1554_v3, %v1566_v40  ;;  %v1429_v36 = vpop.xlane.xlu1 %1428  ;;  %v5159_v3 = vadd.f32 %v5090_v59, %v5007_v41 }
 0x4c3   : > { %4012 = vrcp.f32 %v1429_v36  ;;  %v1462_v4 = vand.u32 2147483648, %v1429_v36  ;;  %vm1456_vm12 = vweird.f32 %v1429_v36  ;;  %v1460_v8 = vand.u32 2147483647, %v1429_v36 }
 0x4c4   : > { %4014 = vrcp.f32 %v5128_v25  ;;  %v1579_v49 = vmul.f32 1.442695, %v1574_v44  ;;  %v1561_v15 = vsel %vm1236_vm13, %v5159_v3, -inf }
 0x4c5   : > { %v1463_v59 = vor.u32 1.1754944e-38, %v1462_v4  ;;  %vm1461_vm1 = vcmp.eq.f32.partialorder %v1460_v8, 8.507059e+37 }
 0x4c6   : > { %1268 = vadd.xlane.f32.xlu1 %v1267_v51  ;;  %4016 = vpow2.f32 %v1579_v49 }
 0x4c9   : > { %v4013_v50 = vpop.eup %4012  ;;  %v1411_v56 = vpop.xlane.xlu2 %1410 }
 0x4ca   : > { %v4015_v46 = vpop.eup %4014  ;;  %v1415_v30 = vsub.f32 %v1398_v11, %v1411_v56  ;;  %v1452_v48 = vmul.f32 %v4013_v50, %v1429_v36  ;;  %vm1457_vm9 = vweird.f32 %v4013_v50 }
 0x4cb   : > { %v1437_v37 = vmul.f32 %v4015_v46, %v5128_v25  ;;  %vm1442_vm11 = vweird.f32 %v4015_v46  ;;  %vm1458_vm14 = vmor %vm1456_vm12, %vm1457_vm9  ;;  %v1734_v25 = vsub.f32 %v5084_v54, %v5123_v24 }
 0x4cc   : > { %v1422_v32 = vmul.f32 1.442695, %v1415_v30  ;;  %v5146_v23 = vpop.eup %4016  ;;  %v1453_v61 = vsub.f32 1.0, %v1452_v48  ;;  %vm1443_vm0 = vmor %vm1441_vm15, %vm1442_vm11 }
 0x4cd   : > { %v1588_v39 = vsel %vm1236_vm13, %v5146_v23, 0.0  ;;  %v1438_v2 = vsub.f32 1.0, %v1437_v37  ;;  %v1739_v35 = vmul.f32 1.442695, %v1734_v25 }
 0x4ce   : > { %4018 = vpow2.f32 %v1422_v32  ;;  %1746 = vadd.xlane.f32.xlu1 %v1745_v53  ;;  %1589 = vadd.xlane.f32.xlu0 %v1588_v39  ;;  %v1454_v58 = vmul.f32 %v4013_v50, %v1453_v61 }
 0x4cf   : > { %v1439_v57 = vmul.f32 %v4015_v46, %v1438_v2  ;;  %4020 = vpow2.f32 %v1259_v17  ;;  %v1736_v2 = vsub.f32 %v5105_v5, %v5137_v33 }
 0x4d0   : > { %v1455_v55 = vadd.f32 %v4013_v50, %v1454_v58  ;;  %v5164_v1 = vpop.xlane.xlu0 %1571  ;;  %4022 = vpow2.f32 %v1739_v35 }
 0x4d1   : > { %v1440_v7 = vadd.f32 %v4015_v46, %v1439_v57  ;;  %v1743_v9 = vmul.f32 1.442695, %v1736_v2 }
 0x4d2   : > { %v1459_v11 = vsel %vm1458_vm14, %v4013_v50, %v1455_v55 }
 0x4d3   : > { %v1444_v14 = vsel %vm1443_vm0, %v4015_v46, %v1440_v7  ;;  %v1464_v21 = vsel %vm1461_vm1, %v1463_v59, %v1459_v11 }
 0x4d4   : > { %v5153_v60 = vpop.eup %4018  ;;  %v1449_v18 = vsel %vm1446_vm2, %v1448_v16, %v1444_v14  ;;  %v1465_v22 = vmul.f32 %v5102_v26, %v1464_v21 }
 0x4d5   : > { %v1433_v47 = vsel %vm1236_vm13, %v5153_v60, 0.0  ;;  %v1450_v63 = vmul.f32 %v5092_v0, %v1449_v18  ;;  %v5181_v41 = vpop.eup %4020  ;;  %v1735_v0 = vsub.f32 %v5095_v62, %v5130_v27 }
 0x4d6   : > { %1434 = vadd.xlane.f32.xlu2 %v1433_v47  ;;  %v1270_v26 = vsel %vm1236_vm13, %v5181_v41, 0.0  ;;  %v5187_v45 = vpop.eup %4022 }
 0x4d7   : > { %v1496_v20 = vpack.c.bf16 %v1465_v22, %v1450_v63  ;;  %v1741_v54 = vmul.f32 1.442695, %v1735_v0  ;;  %v1748_v24 = vsel %vm1236_vm13, %v5187_v45, 0.0 }
 0x4d9   : > { %4024 = vpow2.f32 %v1741_v54 }
 0x4de   : > { %1562 = vmax.xlane.f32.xlu2 %v1561_v15 }
 0x4df   : > { %v5191_v40 = vpop.eup %4024 }
 0x4e0   : > { %v1751_v44 = vsel %vm1236_vm13, %v5191_v40, 0.0 }
 0x4e3   : > { %v1499_v34 = vpop.permute.xlu0 %1498 }
 0x4e4   : > { %1514 = vmatpush.bf16.msrb.mxu3 %v1499_v34 }
 0x4e6   : > { %1568 = vmax.xlane.f32.xlu2 %v1567_v28 }
 0x4e7   : > { %3236 = vmatmul.msk.bf16.vlgmr.msrb.gmra.mxu3 %vm1236_vm13, %v1496_v20  ;;  %v1576_v20 = vsub.f32 %v5117_v13, %v5164_v1 }
 0x4ee   : > { %1271 = vadd.xlane.f32.xlu2 %v1270_v26  ;;  %v1583_v26 = vmul.f32 1.442695, %v1576_v20 }
 0x4f6   : > { %1749 = vadd.xlane.f32.xlu2 %v1748_v24 }
 0x4fe   : > { %1752 = vadd.xlane.f32.xlu2 %v1751_v44 }
 0x516   : > { %1819 = vrot.lane.b32.xlu2 %v4918_v29, %s4558_s3 }
 0x531   : > { %v1432_v62 = vpop.xlane.xlu1 %1431 }
 0x532   : > { %4026 = vrcp.f32 %v1432_v62  ;;  %v1477_v37 = vand.u32 2147483648, %v1432_v62  ;;  %vm1471_vm4 = vweird.f32 %v1432_v62  ;;  %v1475_v39 = vand.u32 2147483647, %v1432_v62 }
 0x534   : > { %v1478_v7 = vor.u32 1.1754944e-38, %v1477_v37  ;;  %vm1476_vm9 = vcmp.eq.f32.partialorder %v1475_v39, 8.507059e+37 }
 0x538   : > { %v4027_v27 = vpop.eup %4026 }
 0x539   : > { %v1467_v36 = vmul.f32 %v4027_v27, %v1432_v62  ;;  %v5197_v56 = vpop.xlane.xlu1 %1268  ;;  %vm1472_vm3 = vweird.f32 %v4027_v27 }
 0x53a   : > { %vm5203_vm5 = vmor %vm1471_vm4, %vm1472_vm3  ;;  %vm1308_vm0 = vweird.f32 %v5197_v56  ;;  %v1314_v13 = vand.u32 2147483648, %v5197_v56 }
 0x53b   : > { %v1468_v49 = vsub.f32 1.0, %v1467_v36 }
 0x53c   : > { %v1315_v37 = vor.u32 1.1754944e-38, %v1314_v13 }
 0x53d   : > { %v1469_v50 = vmul.f32 %v4027_v27, %v1468_v49  ;;  %v1312_v49 = vand.u32 2147483647, %v5197_v56 }
 0x53f   : > { %v1470_v30 = vadd.f32 %v4027_v27, %v1469_v50  ;;  %vm1313_vm3 = vcmp.eq.f32.partialorder %v1312_v49, 8.507059e+37 }
 0x541   : > { %v5209_v10 = vpop.xlane.xlu1 %1746 }
 0x549   : > { %v1435_v51 = vpop.xlane.xlu2 %1434 }
 0x54a   : > { %4028 = vrcp.f32 %v1435_v51  ;;  %v1492_v57 = vand.u32 2147483648, %v1435_v51  ;;  %v1490_v4 = vand.u32 2147483647, %v1435_v51  ;;  %vm1486_vm11 = vweird.f32 %v1435_v51 }
 0x54b   : > { %4030 = vrcp.f32 %v5197_v56 }
 0x54c   : > { %v1493_v5 = vor.u32 1.1754944e-38, %v1492_v57  ;;  %vm1491_vm14 = vcmp.eq.f32.partialorder %v1490_v4, 8.507059e+37 }
 0x550   : > { %v4029_v46 = vpop.eup %4028 }
 0x551   : > { %v1482_v48 = vmul.f32 %v4029_v46, %v1435_v51  ;;  %v1563_v32 = vpop.xlane.xlu2 %1562  ;;  %vm1487_vm6 = vweird.f32 %v4029_v46  ;;  %v4031_v11 = vpop.eup %4030 }
 0x552   : > { %v1573_v53 = vsub.f32 %v5159_v3, %v1563_v32  ;;  %v1474_v3 = vsel %vm5203_vm5, %v4027_v27, %v1470_v30  ;;  %vm1488_vm12 = vmor %vm1486_vm11, %vm1487_vm6  ;;  %v1304_v17 = vmul.f32 %v4031_v11, %v5197_v56  ;;  %vm1309_vm15 = vweird.f32 %v4031_v11 }
 0x553   : > { %v1483_v61 = vsub.f32 1.0, %v1482_v48  ;;  %v1479_v33 = vsel %vm1476_vm9, %v1478_v7, %v1474_v3  ;;  %vm5235_vm1 = vmor %vm1308_vm0, %vm1309_vm15  ;;  %v1768_v3 = vand.u32 2147483648, %v5209_v10  ;;  %vm1762_vm11 = vweird.f32 %v5209_v10 }
 0x554   : > { %v1577_v47 = vmul.f32 1.442695, %v1573_v53  ;;  %v1480_v15 = vmul.f32 %v5133_v19, %v1479_v33  ;;  %v1305_v34 = vsub.f32 1.0, %v1304_v17  ;;  %v1766_v7 = vand.u32 2147483647, %v5209_v10 }
 0x555   : > { %v1484_v55 = vmul.f32 %v4029_v46, %v1483_v61 }
 0x556   : > { %4032 = vpow2.f32 %v1577_v47  ;;  %v1306_v35 = vmul.f32 %v4031_v11, %v1305_v34  ;;  %vm1767_vm15 = vcmp.eq.f32.partialorder %v1766_v7, 8.507059e+37 }
 0x557   : > { %v1485_v8 = vadd.f32 %v4029_v46, %v1484_v55  ;;  %4034 = vrcp.f32 %v5209_v10 }
 0x558   : > { %4036 = vpow2.f32 %v1743_v9  ;;  %v1307_v24 = vadd.f32 %v4031_v11, %v1306_v35 }
 0x559   : > { %v1569_v12 = vpop.xlane.xlu2 %1568  ;;  %v1489_v59 = vsel %vm1488_vm12, %v4029_v46, %v1485_v8 }
 0x55a   : > { %v1494_v14 = vsel %vm1491_vm14, %v1493_v5, %v1489_v59  ;;  %v1575_v18 = vsub.f32 %v5172_v6, %v1569_v12  ;;  %v1311_v50 = vsel %vm5235_vm1, %v4031_v11, %v1307_v24  ;;  %v5281_v24 = vpop.xlane.xlu0 %1589 }
 0x55b   : > { %v1495_v16 = vmul.f32 %v5153_v60, %v1494_v14  ;;  %v1316_v56 = vsel %vm1313_vm3, %v1315_v37, %v1311_v50 }
 0x55c   : > { %v5214_v21 = vpop.eup %4032  ;;  %v1581_v25 = vmul.f32 1.442695, %v1575_v18  ;;  %v1317_v12 = vmul.f32 %v5139_v43, %v1316_v56 }
 0x55d   : > { %v1585_v22 = vsel %vm1236_vm13, %v5214_v21, 0.0  ;;  %v1497_v63 = vpack.c.bf16 %v1495_v16, %v1480_v15  ;;  %v5221_v28 = vpop.eup %4034  ;;  %v1769_v16 = vor.u32 1.1754944e-38, %v1768_v3 }
 0x55e   : > { %1586 = vadd.xlane.f32.xlu1 %v1585_v22  ;;  %v5223_v60 = vpop.eup %4036  ;;  %v1758_v6 = vmul.f32 %v5221_v28, %v5209_v10  ;;  %vm1763_vm5 = vweird.f32 %v5221_v28 }
 0x55f   : > { %3237 = vmatmul.msk.bf16.gmra.mxu3 %vm1236_vm13, %v1497_v63  ;;  %v1754_v0 = vsel %vm1236_vm13, %v5223_v60, 0.0  ;;  %vm5256_vm12 = vmor %vm1762_vm11, %vm1763_vm5 }
 0x560   : > { %v1759_v44 = vsub.f32 1.0, %v1758_v6 }
 0x561   : > { %v1272_v19 = vpop.xlane.xlu2 %1271 }
 0x562   : > { %4038 = vrcp.f32 %v1272_v19  ;;  %v1760_v46 = vmul.f32 %v5221_v28, %v1759_v44  ;;  %v1329_v48 = vand.u32 2147483648, %v1272_v19  ;;  %v1327_v53 = vand.u32 2147483647, %v1272_v19 }
 0x563   : > { %4040 = vpow2.f32 %v1581_v25  ;;  %vm1323_vm4 = vweird.f32 %v1272_v19 }
 0x564   : > { %v1761_v58 = vadd.f32 %v5221_v28, %v1760_v46  ;;  %v1330_v47 = vor.u32 1.1754944e-38, %v1329_v48  ;;  %vm1328_vm9 = vcmp.eq.f32.partialorder %v1327_v53, 8.507059e+37 }
 0x566   : > { %1755 = vadd.xlane.f32.xlu1 %v1754_v0  ;;  %v1765_v10 = vsel %vm5256_vm12, %v5221_v28, %v1761_v58 }
 0x567   : > { %v1770_v22 = vsel %vm1767_vm15, %v1769_v16, %v1765_v10 }
 0x568   : > { %v4039_v54 = vpop.eup %4038  ;;  %v1771_v25 = vmul.f32 %v5144_v31, %v1770_v22 }
 0x569   : > { %v1319_v62 = vmul.f32 %v4039_v54, %v1272_v19  ;;  %v1750_v27 = vpop.xlane.xlu2 %1749  ;;  %v5231_v36 = vpop.eup %4040  ;;  %vm1324_vm2 = vweird.f32 %v4039_v54 }
 0x56a   : > { %4042 = vrcp.f32 %v1750_v27  ;;  %v1591_v32 = vsel %vm1236_vm13, %v5231_v36, 0.0  ;;  %vm1325_vm6 = vmor %vm1323_vm4, %vm1324_vm2  ;;  %v1783_v33 = vand.u32 2147483648, %v1750_v27  ;;  %v1781_v15 = vand.u32 2147483647, %v1750_v27  ;;  %v5274_v20 = vpop.f32.mrf.mxu3 }
 0x56b   : > { %4044 = vpow2.f32 %v1583_v26  ;;  %v1320_v51 = vsub.f32 1.0, %v1319_v62  ;;  %vm1777_vm0 = vweird.f32 %v1750_v27 }
 0x56c   : > { %v1784_v63 = vor.u32 1.1754944e-38, %v1783_v33  ;;  %vm1782_vm2 = vcmp.eq.f32.partialorder %v1781_v15, 8.507059e+37  ;;  %v3304_v15 = vld [vmem:[#allocation16 + $0x70] sm:$0xf] }
 0x56d   : > { %v1321_v30 = vmul.f32 %v4039_v54, %v1320_v51 }
 0x56e   : > { %1592 = vadd.xlane.f32.xlu1 %v1591_v32 }
 0x56f   : > { %v1322_v39 = vadd.f32 %v4039_v54, %v1321_v30 }
 0x570   : > { %v4043_v61 = vpop.eup %4042 }
 0x571   : > { %v5246_v2 = vpop.eup %4044  ;;  %v1326_v57 = vsel %vm1325_vm6, %v4039_v54, %v1322_v39  ;;  %v1773_v55 = vmul.f32 %v4043_v61, %v1750_v27  ;;  %v5249_v4 = vpop.xlane.xlu2 %1752  ;;  %vm1778_vm14 = vweird.f32 %v4043_v61 }
 0x572   : > { %v1331_v9 = vsel %vm1328_vm9, %v1330_v47, %v1326_v57  ;;  %v1594_v11 = vsel %vm1236_vm13, %v5246_v2, 0.0  ;;  %vm1779_vm1 = vmor %vm1777_vm0, %vm1778_vm14  ;;  %4046 = vrcp.f32 %v5249_v4  ;;  %v5279_v31 = vpop.f32.mrf.mxu3  ;;  %v1798_v13 = vand.u32 2147483648, %v5249_v4 }
 0x573   : > { %v1774_v8 = vsub.f32 1.0, %v1773_v55  ;;  %v1332_v59 = vmul.f32 %v5181_v41, %v1331_v9  ;;  %vm1792_vm4 = vweird.f32 %v5249_v4  ;;  %v1796_v51 = vand.u32 2147483647, %v5249_v4 }
 0x574   : > { %v1799_v53 = vor.u32 1.1754944e-38, %v1798_v13 }
 0x575   : > { %v1775_v14 = vmul.f32 %v4043_v61, %v1774_v8  ;;  %v1334_v17 = vpack.c.bf16 %v1332_v59, %v1317_v12  ;;  %vm1797_vm11 = vcmp.eq.f32.partialorder %v1796_v51, 8.507059e+37 }
 0x576   : > { %1595 = vadd.xlane.f32.xlu1 %v1594_v11 }
 0x577   : > { %v1776_v18 = vadd.f32 %v4043_v61, %v1775_v14  ;;  %3233 = vmatmul.msk.bf16.vlgmr.msrb.gmra.mxu1 %vm1236_vm13, %v1334_v17 }
 0x578   : > { %v4047_v6 = vpop.eup %4046 }
 0x579   : > { %v1780_v43 = vsel %vm1779_vm1, %v4043_v61, %v1776_v18  ;;  %v1820_v41 = vpop.permute.xlu2 %1819  ;;  %v1788_v0 = vmul.f32 %v4047_v6, %v5249_v4  ;;  %vm1793_vm3 = vweird.f32 %v4047_v6 }
 0x57a   : > { %v1785_v34 = vsel %vm1782_vm2, %v1784_v63, %v1780_v43  ;;  %1835 = vmatpush.bf16.msra.mxu3 %v1820_v41  ;;  %vm5290_vm5 = vmor %vm1792_vm4, %vm1793_vm3  ;;  %v1623_v41 = vand.u32 2147483648, %v5281_v24  ;;  %vm1617_vm3 = vweird.f32 %v5281_v24 }
 0x57b   : > { %v1786_v28 = vmul.f32 %v5187_v45, %v1785_v34  ;;  %v1789_v54 = vsub.f32 1.0, %v1788_v0  ;;  %v1621_v34 = vand.u32 2147483647, %v5281_v24 }
 0x57d   : > { %v1817_v19 = vpack.c.bf16 %v1786_v28, %v1771_v25  ;;  %v1790_v45 = vmul.f32 %v4047_v6, %v1789_v54  ;;  %v1624_v54 = vor.u32 1.1754944e-38, %v1623_v41 }
 0x57f   : > { %3244 = vmatmul.msk.bf16.vlgmr.msra.gmra.mxu3 %vm1236_vm13, %v1817_v19  ;;  %v1791_v62 = vadd.f32 %v4047_v6, %v1790_v45  ;;  %v3296_v19 = vld [vmem:[#allocation16 + $0x60] sm:$0xf] }
 0x581   : > { %v1795_v37 = vsel %vm5290_vm5, %v4047_v6, %v1791_v62  ;;  %v3649_v6 = vld [vmem:[#allocation16 + $0x64] sm:$0xf0] }
 0x582   : > { %v1800_v57 = vsel %vm1797_vm11, %v1799_v53, %v1795_v37 }
 0x583   : > { %v1801_v8 = vmul.f32 %v5191_v40, %v1800_v57 }
 0x58f   : > { %1659 = vrot.lane.b32.xlu1 %v4918_v29, %s4560_s29 }
 0x5d1   : > { %v5276_v35 = vpop.xlane.xlu1 %1586 }
 0x5d2   : > { %v1608_v17 = vand.u32 2147483648, %v5276_v35  ;;  %vm1602_vm1 = vweird.f32 %v5276_v35  ;;  %v1606_v63 = vand.u32 2147483647, %v5276_v35 }
 0x5d4   : > { %v1609_v0 = vor.u32 1.1754944e-38, %v1608_v17  ;;  %vm1607_vm5 = vcmp.eq.f32.partialorder %v1606_v63, 8.507059e+37  ;;  %v3256_v17 = vld [vmem:[#allocation16 + $0x10] sm:$0xf]  ;;  %v3637_v63 = vld [vmem:[#allocation16 + $0x4] sm:$0xf0] }
 0x5d9   : > { %v1756_v26 = vpop.xlane.xlu1 %1755 }
 0x5da   : > { %4048 = vrcp.f32 %v1756_v26  ;;  %v1813_v30 = vand.u32 2147483648, %v1756_v26  ;;  %v1811_v32 = vand.u32 2147483647, %v1756_v26  ;;  %vm1807_vm9 = vweird.f32 %v1756_v26 }
 0x5db   : > { %4050 = vrcp.f32 %v5276_v35 }
 0x5dc   : > { %4052 = vrcp.f32 %v5281_v24  ;;  %v1814_v58 = vor.u32 1.1754944e-38, %v1813_v30  ;;  %vm1812_vm14 = vcmp.eq.f32.partialorder %v1811_v32, 8.507059e+37  ;;  %v3288_v30 = vld [vmem:[#allocation16 + $0x50] sm:$0xf] }
 0x5e0   : > { %v4049_v44 = vpop.eup %4048 }
 0x5e1   : > { %v1803_v29 = vmul.f32 %v4049_v44, %v1756_v26  ;;  %v5286_v49 = vpop.xlane.xlu1 %1592  ;;  %vm1808_vm6 = vweird.f32 %v4049_v44  ;;  %v4051_v48 = vpop.eup %4050 }
 0x5e2   : > { %v1521_v27 = vpop.f32.mrf.mxu3  ;;  %v4053_v61 = vpop.eup %4052  ;;  %vm1809_vm12 = vmor %vm1807_vm9, %vm1808_vm6  ;;  %v1598_v56 = vmul.f32 %v4051_v48, %v5276_v35  ;;  %vm1603_vm15 = vweird.f32 %v4051_v48  ;;  %vm1622_vm6 = vcmp.eq.f32.partialorder %v1621_v34, 8.507059e+37  ;;  %v1638_v57 = vand.u32 2147483648, %v5286_v49 }
 0x5e3   : > { %v1804_v1 = vsub.f32 1.0, %v1803_v29  ;;  %v1613_v4 = vmul.f32 %v4053_v61, %v5281_v24  ;;  %vm1618_vm0 = vweird.f32 %v4053_v61  ;;  %vm1604_vm2 = vmor %vm1602_vm1, %vm1603_vm15  ;;  %vm1632_vm15 = vweird.f32 %v5286_v49 }
 0x5e4   : > { %v1599_v5 = vsub.f32 1.0, %v1598_v56  ;;  %vm1619_vm4 = vmor %vm1617_vm3, %vm1618_vm0 }
 0x5e5   : > { %v1805_v46 = vmul.f32 %v4049_v44, %v1804_v1  ;;  %v1614_v12 = vsub.f32 1.0, %v1613_v4 }
 0x5e6   : > { %v1600_v59 = vmul.f32 %v4051_v48, %v1599_v5 }
 0x5e7   : > { %v1806_v39 = vadd.f32 %v4049_v44, %v1805_v46  ;;  %v1615_v10 = vmul.f32 %v4053_v61, %v1614_v12 }
 0x5e8   : > { %v1601_v14 = vadd.f32 %v4051_v48, %v1600_v59  ;;  %v3272_v59 = vld [vmem:[#allocation16 + $0x30] sm:$0xf] }
 0x5e9   : > { %v1810_v47 = vsel %vm1809_vm12, %v4049_v44, %v1806_v39  ;;  %v5300_v33 = vpop.xlane.xlu1 %1595  ;;  %v1616_v22 = vadd.f32 %v4053_v61, %v1615_v10  ;;  %v3297_v44 = vor.u32 %v3649_v6, %v3296_v19  ;;  %v3643_v10 = vld [vmem:[#allocation16 + $0x34] sm:$0xf0] }
 0x5ea   : > { %v1523_v55 = vpop.f32.mrf.mxu3  ;;  %v1815_v7 = vsel %vm1812_vm14, %v1814_v58, %v1810_v47  ;;  %4054 = vrcp.f32 %v5300_v33  ;;  %v1605_v25 = vsel %vm1604_vm2, %v4051_v48, %v1601_v14  ;;  %v3647_v48 = vld [vmem:[#allocation16 + $0x54] sm:$0xf0]  ;;  %vm1647_vm12 = vweird.f32 %v5300_v33  ;;  %v3280_v47 = vld [vmem:[#allocation16 + $0x40] sm:$0xf] }
 0x5eb   : > { %v3976_v3 = vpack.i.bf16 %v1523_v55, %v1521_v27  ;;  %v1816_v9 = vmul.f32 %v5223_v60, %v1815_v7  ;;  %4056 = vrcp.f32 %v5286_v49  ;;  %v3651_v60 = vld [vmem:[#allocation16 + $0x74] sm:$0xf0]  ;;  %v1620_v26 = vsel %vm1619_vm4, %v4053_v61, %v1616_v22  ;;  %v3645_v55 = vld [vmem:[#allocation16 + $0x44] sm:$0xf0] }
 0x5ec   : > { %v3305_v18 = vor.u32 %v3651_v60, %v3304_v15  ;;  %v1610_v45 = vsel %vm1607_vm5, %v1609_v0, %v1605_v25  ;;  %v1625_v24 = vsel %vm1622_vm6, %v1624_v54, %v1620_v26  ;;  %v3289_v39 = vor.u32 %v3647_v48, %v3288_v30  ;;  %v3264_v15 = vld [vmem:[#allocation16 + $0x20] sm:$0xf]  ;;  %v3641_v60 = vld [vmem:[#allocation16 + $0x24] sm:$0xf0]  ;;  %v3650_v30 = vld [vmem:[#allocation16 + $0x74] sm:$0xf] }
 0x5ed   : > { %3977 = vrot.lane.b32.xlu1 %v3976_v3, %s4559_s16  ;;  %v1818_v11 = vpack.c.bf16 %v1816_v9, %v1801_v8  ;;  %v1611_v13 = vmul.f32 %v5214_v21, %v1610_v45  ;;  %v1626_v51 = vmul.f32 %v5146_v23, %v1625_v24  ;;  %v3966_v23 = vpack.i.bf16 %v5279_v31, %v5274_v20  ;;  %v3306_v48 = vld [vmem:[#allocation16 + $0x78] sm:$0xf0] }
 0x5ee   : > { %2005 = vmatpush.bf16.xpose.msrb.mxu0 %v3305_v18  ;;  %v1653_v21 = vand.u32 2147483648, %v5300_v33  ;;  %v1651_v58 = vand.u32 2147483647, %v5300_v33  ;;  %v1636_v20 = vand.u32 2147483647, %v5286_v49  ;;  %v1639_v8 = vor.u32 1.1754944e-38, %v1638_v57 }
 0x5ef   : > { %3245 = vmatmul.msk.bf16.gmra.mxu3 %vm1236_vm13, %v1818_v11  ;;  %v1657_v53 = vpack.c.bf16 %v1626_v51, %v1611_v13  ;;  %v3281_v5 = vor.u32 %v3645_v55, %v3280_v47  ;;  %v3639_v18 = vld [vmem:[#allocation16 + $0x14] sm:$0xf0]  ;;  %v3640_v55 = vld [vmem:[#allocation16 + $0x24] sm:$0xf] }
 0x5f0   : > { %v5306_v16 = vpop.eup %4054  ;;  %v1654_v4 = vor.u32 1.1754944e-38, %v1653_v21  ;;  %vm1652_vm1 = vcmp.eq.f32.partialorder %v1651_v58, 8.507059e+37  ;;  %vm1637_vm2 = vcmp.eq.f32.partialorder %v1636_v20, 8.507059e+37  ;;  %v3257_v22 = vor.u32 %v3639_v18, %v3256_v17  ;;  %v3282_v58 = vld [vmem:[#allocation16 + $0x48] sm:$0xf0] }
 0x5f1   : > { %v5311_v43 = vpop.eup %4056  ;;  %v1643_v28 = vmul.f32 %v5306_v16, %v5300_v33  ;;  %vm1648_vm9 = vweird.f32 %v5306_v16  ;;  %v3642_v20 = vld [vmem:[#allocation16 + $0x34] sm:$0xf] }
 0x5f2   : > { %v1628_v35 = vmul.f32 %v5311_v43, %v5286_v49  ;;  %vm1633_vm11 = vweird.f32 %v5311_v43  ;;  %vm1649_vm14 = vmor %vm1647_vm12, %vm1648_vm9 }
 0x5f3   : > { %v1644_v29 = vsub.f32 1.0, %v1643_v28  ;;  %vm1634_vm0 = vmor %vm1632_vm15, %vm1633_vm11 }
 0x5f4   : > { %v1361_v40 = vpop.f32.mrf.mxu1  ;;  %v1629_v1 = vsub.f32 1.0, %v1628_v35 }
 0x5f5   : > { %v1645_v50 = vmul.f32 %v5306_v16, %v1644_v29 }
 0x5f6   : > { %2006 = vmatpush.bf16.xpose.msrb.mxu0 %v3297_v44  ;;  %v1630_v37 = vmul.f32 %v5311_v43, %v1629_v1 }
 0x5f7   : > { %v1646_v61 = vadd.f32 %v5306_v16, %v1645_v50 }
 0x5f8   : > { %v1631_v56 = vadd.f32 %v5311_v43, %v1630_v37  ;;  %v3648_v37 = vld [vmem:[#allocation16 + $0x64] sm:$0xf] }
 0x5f9   : > { %v1650_v31 = vsel %vm1649_vm14, %v5306_v16, %v1646_v61  ;;  %v3265_v16 = vor.u32 %v3641_v60, %v3264_v15  ;;  %v3646_v61 = vld [vmem:[#allocation16 + $0x54] sm:$0xf] }
 0x5fa   : > { %v1635_v7 = vsel %vm1634_vm0, %v5311_v43, %v1631_v56  ;;  %v1655_v9 = vsel %vm1652_vm1, %v1654_v4, %v1650_v31  ;;  %v3644_v56 = vld [vmem:[#allocation16 + $0x44] sm:$0xf]  ;;  %v3274_v31 = vld [vmem:[#allocation16 + $0x38] sm:$0xf0]  ;;  %v3266_v4 = vld [vmem:[#allocation16 + $0x28] sm:$0xf0] }
 0x5fb   : > { %v1640_v11 = vsel %vm1637_vm2, %v1639_v8, %v1635_v7  ;;  %v1656_v12 = vmul.f32 %v5246_v2, %v1655_v9  ;;  %v3248_v2 = vld [vmem:[#allocation16] sm:$0xf]  ;;  %v3285_v57 = vor.u32 %v3644_v56, %v3282_v58  ;;  %v3277_v47 = vor.u32 %v3642_v20, %v3274_v31  ;;  %v3638_v7 = vld [vmem:[#allocation16 + $0x14] sm:$0xf]  ;;  %v3258_v8 = vld [vmem:[#allocation16 + $0x18] sm:$0xf0] }
 0x5fc   : > { %v1363_v62 = vpop.f32.mrf.mxu1  ;;  %v1641_v49 = vmul.f32 %v5231_v36, %v1640_v11  ;;  %v3249_v43 = vor.u32 %v3637_v63, %v3248_v2  ;;  %v3261_v9 = vor.u32 %v3638_v7, %v3258_v8  ;;  %v3653_v56 = vld [vmem:[#allocation17 + $0x8] sm:$0xff]  ;;  %v3660_v20 = vld [vmem:[#allocation17 + $0x40] sm:$0xff]  ;;  %v3691_v31 = vld [vmem:[#allocation19 + $0x78] sm:$0xff] }
 0x5fd   : > { %v3956_v27 = vpack.i.bf16 %v1363_v62, %v1361_v40  ;;  %v3273_v40 = vor.u32 %v3643_v10, %v3272_v59  ;;  %v3661_v58 = vld [vmem:[#allocation17 + $0x48] sm:$0xff]  ;;  %v3679_v7 = vld [vmem:[#allocation19 + $0x18] sm:$0xff] }
 0x5fe   : > { %2007 = vmatpush.bf16.xpose.msrb.mxu0 %v3289_v39  ;;  %v1658_v14 = vpack.c.bf16 %v1656_v12, %v1641_v49  ;;  %v3689_v8 = vld [vmem:[#allocation19 + $0x68] sm:$0xff] }
 0x5ff   : > { %3957 = vrot.lane.b32.xlu2 %v3956_v27, %s4558_s3 }
 0x601   : > { %v1660_v46 = vpop.permute.xlu1 %1659 }
 0x602   : > { %1675 = vmatpush.bf16.msra.mxu1 %v1660_v46  ;;  %v1837_v32 = vpop.f32.mrf.mxu3 }
 0x605   : > { %3240 = vmatmul.msk.bf16.vlgmr.msra.gmra.mxu1 %vm1236_vm13, %v1657_v53  ;;  %v3298_v53 = vld [vmem:[#allocation16 + $0x68] sm:$0xf0] }
 0x606   : > { %2008 = vmatpush.bf16.xpose.msrb.mxu0 %v3281_v5  ;;  %v3301_v39 = vor.u32 %v3648_v37, %v3298_v53  ;;  %v3636_v5 = vld [vmem:[#allocation16 + $0x4] sm:$0xf]  ;;  %v3655_v37 = vld [vmem:[#allocation17 + $0x18] sm:$0xff] }
 0x607   : > { %3967 = vrot.lane.b32.xlu2 %v3966_v23, %s4560_s29  ;;  %v3290_v23 = vld [vmem:[#allocation16 + $0x58] sm:$0xf0] }
 0x608   : > { %v3293_v21 = vor.u32 %v3646_v61, %v3290_v23  ;;  %v3663_v53 = vld [vmem:[#allocation17 + $0x58] sm:$0xff]  ;;  %v3680_v61 = vld [vmem:[#allocation19 + $0x20] sm:$0xff]  ;;  %v3654_v23 = vld [vmem:[#allocation17 + $0x10] sm:$0xff] }
 0x60a   : > { %v1839_v3 = vpop.f32.mrf.mxu3 }
 0x60b   : > { %v3971_v33 = vpack.i.bf16 %v1839_v3, %v1837_v32  ;;  %v3309_v32 = vor.u32 %v3650_v30, %v3306_v48  ;;  %v3269_v3 = vor.u32 %v3640_v55, %v3266_v4  ;;  %v4087_v30 = vld [vmem:[%s4819_s17 + $0x8] sm:$0xff] }
 0x60c   : > { %v3690_v55 = vld [vmem:[#allocation19 + $0x70] sm:$0xff] }
 0x60d   : > { %2019 = vmatpush.bf16.xpose.msrb.mxu1 %v3309_v32  ;;  %v3698_v4 = vld [vmem:[#allocation19 + $0xb0] sm:$0xff] }
 0x60e   : > { %2009 = vmatpush.bf16.xpose.msrb.mxu0 %v3273_v40 }
 0x60f   : > { %3972 = vrot.lane.b32.xlu2 %v3971_v33, %s4560_s29  ;;  %v3250_v33 = vld [vmem:[#allocation16 + $0x8] sm:$0xf0] }
 0x610   : > { %v3253_v11 = vor.u32 %v3636_v5, %v3250_v33  ;;  %v3670_v5 = vld [vmem:[#allocation17 + $0x90] sm:$0xff] }
 0x611   : > { %v3678_v33 = vld [vmem:[#allocation19 + $0x10] sm:$0xff] }
 0x615   : > { %3241 = vmatmul.msk.bf16.gmra.mxu1 %vm1236_vm13, %v1658_v14 }
 0x616   : > { %2010 = vmatpush.bf16.xpose.msrb.mxu0 %v3265_v16  ;;  %2020 = vmatpush.bf16.xpose.msrb.mxu1 %v3301_v39  ;;  %v3672_v39 = vld [vmem:[#allocation17 + $0xa0] sm:$0xff] }
 0x61e   : > { %2011 = vmatpush.bf16.xpose.msrb.mxu0 %v3257_v22  ;;  %2021 = vmatpush.bf16.xpose.msrb.mxu1 %v3293_v21  ;;  %v3662_v21 = vld [vmem:[#allocation17 + $0x50] sm:$0xff] }
 0x626   : > { %2012 = vmatpush.bf16.xpose.msrb.mxu0 %v3249_v43  ;;  %2022 = vmatpush.bf16.xpose.msrb.mxu1 %v3285_v57  ;;  %v3652_v57 = vld [vmem:[#allocation17] sm:$0xff] }
 0x62e   : > { %2023 = vmatpush.bf16.xpose.msrb.mxu1 %v3277_v47  ;;  %v3699_v47 = vld [vmem:[#allocation19 + $0xb8] sm:$0xff] }
 0x636   : > { %2024 = vmatpush.bf16.xpose.msrb.mxu1 %v3269_v3  ;;  %v3671_v3 = vld [vmem:[#allocation17 + $0x98] sm:$0xff] }
 0x63e   : > { %2025 = vmatpush.bf16.xpose.msrb.mxu1 %v3261_v9  ;;  %v3697_v9 = vld [vmem:[#allocation19 + $0xa8] sm:$0xff] }
 0x646   : > { %2026 = vmatpush.bf16.xpose.msrb.mxu1 %v3253_v11  ;;  %v3688_v11 = vld [vmem:[#allocation19 + $0x60] sm:$0xff] }
 0x659   : > { %v3958_v36 = vpop.permute.xlu2 %3957 }
 0x65a   : > { %v3960_v41 = vunpack.i.h.bf16 %v3958_v36  ;;  %v3959_v34 = vunpack.i.l.bf16 %v3958_v36 }
 0x65c   : > { %v1896_v0 = vsel %vm1034_vm7, %v5081_v38, %v3960_v41  ;;  %v1895_v26 = vsel %vm1034_vm7, %v5072_v52, %v3959_v34  ;;  %v3659_v41 = vld [vmem:[#allocation17 + $0x38] sm:$0xff] }
 0x65d   : > { %v3667_v34 = vld [vmem:[#allocation17 + $0x78] sm:$0xff]  ;;  %2266 = vmatpush.bf16.xpose.msrb.mxu2 %v3659_v41 }
 0x65e   : > { %2280 = vmatpush.bf16.xpose.msrb.mxu3 %v3667_v34 }
 0x65f   : > { %v3978_v25 = vpop.permute.xlu1 %3977 }
 0x660   : > { %v3980_v35 = vunpack.i.h.bf16 %v3978_v25  ;;  %v3979_v54 = vunpack.i.l.bf16 %v3978_v25  ;;  %v3658_v25 = vld [vmem:[#allocation17 + $0x30] sm:$0xff] }
 0x661   : > { %v3968_v28 = vpop.permute.xlu2 %3967 }
 0x662   : > { %v3970_v19 = vunpack.i.h.bf16 %v3968_v28  ;;  %v3969_v6 = vunpack.i.l.bf16 %v3968_v28  ;;  %v3666_v28 = vld [vmem:[#allocation17 + $0x70] sm:$0xff] }
 0x664   : > { %v1897_v45 = vsel %vm1037_vm8, %v1895_v26, %v3969_v6  ;;  %v1898_v44 = vsel %vm1037_vm8, %v1896_v0, %v3970_v19  ;;  %v3675_v19 = vld [vmem:[#allocation17 + $0xb8] sm:$0xff]  ;;  %v3657_v0 = vld [vmem:[#allocation17 + $0x28] sm:$0xff] }
 0x665   : > { %v1899_v29 = vsel %vm1040_vm10, %v1897_v45, %v3979_v54  ;;  %v1900_v62 = vsel %vm1040_vm10, %v1898_v44, %v3980_v35  ;;  %2267 = vmatpush.bf16.xpose.msrb.mxu2 %v3658_v25  ;;  %v3683_v6 = vld [vmem:[#allocation19 + $0x38] sm:$0xff]  ;;  %2294 = vmatpush.bf16.xpose.msra.mxu0 %v3675_v19  ;;  %v3665_v26 = vld [vmem:[#allocation17 + $0x68] sm:$0xff]  ;;  %v3674_v44 = vld [vmem:[#allocation17 + $0xb0] sm:$0xff] }
 0x666   : > { %v1907_v24 = vpack.c.bf16 %v1900_v62, %v1899_v29  ;;  %2281 = vmatpush.bf16.xpose.msrb.mxu3 %v3666_v28  ;;  %2500 = vmatpush.bf16.xpose.msra.mxu1 %v3683_v6  ;;  %v3682_v29 = vld [vmem:[#allocation19 + $0x30] sm:$0xff]  ;;  %v3684_v28 = vld [vmem:[#allocation19 + $0x40] sm:$0xff] }
 0x667   : > { %v4086_v62 = vld [vmem:[%s4819_s17] sm:$0xff]  ;;  %s2889_s17 = scalar_lea.hbm %s5592_s7, %s3724_s18 }
 0x668   : > { %2013 = vmatmul.bf16.vlgmr.msrb.gmra.mxu0 %v1907_v24  ;;  %v3692_v19 = vld [vmem:[#allocation19 + $0x80] sm:$0xff] }
 0x669   : > { %v3973_v12 = vpop.permute.xlu2 %3972 }
 0x66a   : > { %v3975_v40 = vunpack.i.h.bf16 %v3973_v12  ;;  %v3974_v15 = vunpack.i.l.bf16 %v3973_v12  ;;  %v3696_v12 = vld [vmem:[#allocation19 + $0xa0] sm:$0xff] }
 0x66d   : > { %2268 = vmatpush.bf16.xpose.msrb.mxu2 %v3657_v0  ;;  %2295 = vmatpush.bf16.xpose.msra.mxu0 %v3674_v44 }
 0x66e   : > { %2282 = vmatpush.bf16.xpose.msrb.mxu3 %v3665_v26  ;;  %2501 = vmatpush.bf16.xpose.msra.mxu1 %v3682_v29  ;;  %v3588_v29 = vld [vmem:[#allocation20 + $0xa8] sm:$0xf] }
 0x672   : > { %v1842_v27 = vpop.f32.mrf.mxu3 }
 0x67a   : > { %v1844_v13 = vpop.f32.mrf.mxu3 }
 0x67b   : > { %v3981_v1 = vpack.i.bf16 %v1844_v13, %v1842_v27  ;;  %v3656_v13 = vld [vmem:[#allocation17 + $0x20] sm:$0xff] }
 0x67c   : > { %2269 = vmatpush.bf16.xpose.msrb.mxu2 %v3656_v13  ;;  %v3590_v13 = vld [vmem:[#allocation20 + $0xb4] sm:$0xf0] }
 0x67d   : > { %3982 = vrot.lane.b32.xlu2 %v3981_v1, %s4559_s16  ;;  %v3664_v1 = vld [vmem:[#allocation17 + $0x60] sm:$0xff]  ;;  %s2892_s16 = sshll.u32 %s2889_s17, 4  ;;  %s2893_s16 = int_to_ptr.hbm [resolvable:$true] %s2892_s16 }
 0x67e   : > { %2283 = vmatpush.bf16.xpose.msrb.mxu3 %v3664_v1  ;;  %s4462_s5 = sshra.s32 %s2893_s16, 4  ;;  %s4463_s5 = int_to_ptr.hbm [resolvable:$true] %s4462_s5 }
 0x67f   : > { %s4464_s29 = scalar_lea.hbm %s4463_s5, 16  ;;  %p4469_p12 = scmp.lt.s32.totalorder %s4463_s5, %s5592_s7 }
 0x680   : > { %p4465_p1 = scmp.ne.s32.totalorder %s4463_s5, %s4464_s29  ;;  %p4470_p8 = scmp.lt.s32.totalorder %s4468_s4, %s4464_s29 }
 0x682   : > { %v1677_v38 = vpop.f32.mrf.mxu1  ;;  %p4466_p3 = pnand %p4465_p1, %p4779_p13  ;;  %p4471_p7 = por %p4470_p8, %p4469_p12 }
 0x684   : > { %2270 = vmatpush.bf16.xpose.msrb.mxu2 %v3655_v37  ;;  %p4467_p4 = pneg %p4466_p3 }
 0x686   : > { %2284 = vmatpush.bf16.xpose.msrb.mxu3 %v3663_v53  ;;  %v3987_v53 = vld [vmem:[%s5534_s2] ss:$0 sm:$0xff]  ;;  %p4472_p9 = pnand %p4471_p7, %p4467_p4 }
 0x68a   : > { %v1679_v51 = vpop.f32.mrf.mxu1 }
 0x68c   : > { %2271 = vmatpush.bf16.xpose.msrb.mxu2 %v3654_v23 }
 0x68e   : > { %2285 = vmatpush.bf16.xpose.msrb.mxu3 %v3662_v21 }
 0x692   : > { %v1682_v52 = vpop.f32.mrf.mxu1 }
 0x694   : > { %2272 = vmatpush.bf16.xpose.msrb.mxu2 %v3653_v56 }
 0x696   : > { %2286 = vmatpush.bf16.xpose.msrb.mxu3 %v3661_v58  ;;  %v3596_v58 = vld [vmem:[#allocation20 + $0xb0] sm:$0xf] }
 0x69a   : > { %v1684_v50 = vpop.f32.mrf.mxu1 }
 0x69b   : > { %v3961_v46 = vpack.i.bf16 %v1684_v50, %v1682_v52  ;;  %v3673_v50 = vld [vmem:[#allocation17 + $0xa8] sm:$0xff] }
 0x69c   : > { %2296 = vmatpush.bf16.xpose.msra.mxu0 %v3673_v50  ;;  %2273 = vmatpush.bf16.xpose.msrb.mxu2 %v3652_v57  ;;  %v3576_v50 = vld [vmem:[#allocation20 + $0x90] sm:$0xf]  ;;  %v3723_v57 = vld [vmem:[#allocation20 + $0xb8] sm:$0xf0] }
 0x69d   : > { %3962 = vrot.lane.b32.xlu0 %v3961_v46, %s4558_s3  ;;  %v3681_v46 = vld [vmem:[#allocation19 + $0x28] sm:$0xff]  ;;  %s2890_s3 = sshll.u32 %s640_s1, 4  ;;  %s2891_s3 = int_to_ptr.vmem [resolvable:$true] %s2890_s3 }
 0x69e   : > { %2502 = vmatpush.bf16.xpose.msra.mxu1 %v3681_v46  ;;  %2287 = vmatpush.bf16.xpose.msrb.mxu3 %v3660_v20  ;;  %v3719_v46 = vld [vmem:[#allocation20 + $0x98] sm:$0xf0] }
 0x6a4   : > { %2297 = vmatpush.bf16.xpose.msra.mxu0 %v3672_v39  ;;  %2514 = vmatpush.bf16.xpose.msra.mxu2 %v3691_v31 }
 0x6a6   : > { %2503 = vmatpush.bf16.xpose.msra.mxu1 %v3680_v61  ;;  %2528 = vmatpush.bf16.xpose.msra.mxu3 %v3699_v47  ;;  %v3577_v61 = vor.u32 %v3719_v46, %v3576_v50 }
 0x6ac   : > { %2515 = vmatpush.bf16.xpose.msra.mxu2 %v3690_v55  ;;  %2298 = vmatpush.bf16.xpose.msra.mxu0 %v3671_v3  ;;  %v3597_v55 = vor.u32 %v3723_v57, %v3596_v58  ;;  %v3720_v3 = vld [vmem:[#allocation20 + $0xa0] sm:$0xf0]  ;;  %v3703_v58 = vld [vmem:[#allocation20 + $0x1c] sm:$0xf]  ;;  %v3518_v57 = vld [vmem:[#allocation20 + $0x24] sm:$0xf0] }
 0x6ae   : > { %2529 = vmatpush.bf16.xpose.msra.mxu3 %v3698_v4  ;;  %2504 = vmatpush.bf16.xpose.msra.mxu1 %v3679_v7  ;;  %v3584_v4 = vld [vmem:[#allocation20 + $0x98] sm:$0xf] }
 0x6af   : > { %v3585_v7 = vor.u32 %v3720_v3, %v3584_v4  ;;  %v3702_v4 = vld [vmem:[#allocation20 + $0x10] sm:$0xf0] }
 0x6b4   : > { %2516 = vmatpush.bf16.xpose.msra.mxu2 %v3689_v8  ;;  %2299 = vmatpush.bf16.xpose.msra.mxu0 %v3670_v5  ;;  %v3572_v8 = vld [vmem:[#allocation20 + $0x80] sm:$0xf] }
 0x6b6   : > { %2530 = vmatpush.bf16.xpose.msra.mxu3 %v3697_v9  ;;  %2505 = vmatpush.bf16.xpose.msra.mxu1 %v3678_v33  ;;  %v3717_v9 = vld [vmem:[#allocation20 + $0x88] sm:$0xf0]  ;;  %v3564_v33 = vld [vmem:[#allocation20 + $0x78] sm:$0xf] }
 0x6b7   : > { %v3573_v5 = vor.u32 %v3717_v9, %v3572_v8 }
 0x6bc   : > { %2517 = vmatpush.bf16.xpose.msra.mxu2 %v3688_v11  ;;  %v3716_v11 = vld [vmem:[#allocation20 + $0x80] sm:$0xf0] }
 0x6be   : > { %2531 = vmatpush.bf16.xpose.msra.mxu3 %v3696_v12  ;;  %v3715_v12 = vld [vmem:[#allocation20 + $0x7c] sm:$0xf] }
 0x6d7   : > { %v3983_v49 = vpop.permute.xlu2 %3982 }
 0x6d8   : > { %v3985_v60 = vunpack.i.h.bf16 %v3983_v49  ;;  %v3984_v16 = vunpack.i.l.bf16 %v3983_v49  ;;  %v3669_v49 = vld [vmem:[#allocation17 + $0x88] sm:$0xff] }
 0x6d9   : > { %2300 = vmatpush.bf16.xpose.msra.mxu0 %v3669_v49  ;;  %v3565_v49 = vor.u32 %v3716_v11, %v3564_v33 }
 0x6e5   : > { %v2014_v35 = vpop.f32.mrf.mxu0 }
 0x70f   : > { %v3963_v59 = vpop.permute.xlu0 %3962 }
 0x710   : > { %v3965_v10 = vunpack.i.h.bf16 %v3963_v59  ;;  %v3964_v14 = vunpack.i.l.bf16 %v3963_v59  ;;  %v3677_v59 = vld [vmem:[#allocation19 + $0x8] sm:$0xff] }
 0x711   : > { %2506 = vmatpush.bf16.xpose.msra.mxu1 %v3677_v59  ;;  %v3566_v59 = vld [vmem:[#allocation20 + $0x84] sm:$0xf0] }
 0x712   : > { %v1902_v17 = vsel %vm1034_vm7, %v1679_v51, %v3965_v10  ;;  %v1901_v18 = vsel %vm1034_vm7, %v1677_v38, %v3964_v14  ;;  %v2016_v38 = vpop.f32.mrf.mxu0  ;;  %v3687_v10 = vld [vmem:[#allocation19 + $0x58] sm:$0xff] }
 0x713   : > { %v1904_v22 = vsel %vm1037_vm8, %v1902_v17, %v3975_v40  ;;  %v1903_v2 = vsel %vm1037_vm8, %v1901_v18, %v3974_v15  ;;  %v3695_v14 = vld [vmem:[#allocation19 + $0x98] sm:$0xff]  ;;  %2518 = vmatpush.bf16.xpose.msra.mxu2 %v3687_v10  ;;  %v3668_v40 = vld [vmem:[#allocation17 + $0x80] sm:$0xff]  ;;  %v3569_v10 = vor.u32 %v3715_v12, %v3566_v59 }
 0x714   : > { %v1905_v63 = vsel %vm1040_vm10, %v1903_v2, %v3984_v16  ;;  %v1906_v43 = vsel %vm1040_vm10, %v1904_v22, %v3985_v60  ;;  %2532 = vmatpush.bf16.xpose.msra.mxu3 %v3695_v14  ;;  %v3676_v15 = vld [vmem:[#allocation19] sm:$0xff]  ;;  %v3686_v60 = vld [vmem:[#allocation19 + $0x50] sm:$0xff]  ;;  %2301 = vmatpush.bf16.xpose.msra.mxu0 %v3668_v40  ;;  %v3685_v2 = vld [vmem:[#allocation19 + $0x48] sm:$0xff] }
 0x715   : > { %v1908_v36 = vpack.c.bf16 %v1906_v43, %v1905_v63  ;;  %v3694_v16 = vld [vmem:[#allocation19 + $0x90] sm:$0xff]  ;;  %v3693_v63 = vld [vmem:[#allocation19 + $0x88] sm:$0xff] }
 0x716   : > { %v3560_v14 = vld [vmem:[#allocation20 + $0x68] sm:$0xf]  ;;  %v3714_v40 = vld [vmem:[#allocation20 + $0x70] sm:$0xf0] }
 0x717   : > { %2027 = vmatmul.bf16.vlgmr.msrb.gmra.mxu1 %v1908_v36 }
 0x719   : > { %2507 = vmatpush.bf16.xpose.msra.mxu1 %v3676_v15  ;;  %v3561_v15 = vor.u32 %v3714_v40, %v3560_v14 }
 0x71b   : > { %2519 = vmatpush.bf16.xpose.msra.mxu2 %v3686_v60  ;;  %v3552_v60 = vld [vmem:[#allocation20 + $0x60] sm:$0xf] }
 0x71c   : > { %2533 = vmatpush.bf16.xpose.msra.mxu3 %v3694_v16  ;;  %v3713_v16 = vld [vmem:[#allocation20 + $0x68] sm:$0xf0] }
 0x723   : > { %2520 = vmatpush.bf16.xpose.msra.mxu2 %v3685_v2 }
 0x724   : > { %2534 = vmatpush.bf16.xpose.msra.mxu3 %v3693_v63  ;;  %v3548_v63 = vld [vmem:[#allocation20 + $0x50] sm:$0xf] }
 0x72b   : > { %2521 = vmatpush.bf16.xpose.msra.mxu2 %v3684_v28 }
 0x72c   : > { %2535 = vmatpush.bf16.xpose.msra.mxu3 %v3692_v19  ;;  %v3542_v19 = vld [vmem:[#allocation20 + $0x54] sm:$0xf0] }
 0x794   : > { %v2028_v54 = vpop.f32.mrf.mxu1 }
 0x795   : > { %v2029_v45 = vadd.f32 %v2028_v54, %v2014_v35 }
 0x797   : > { %v5362_v24 = vadd.f32 %v4086_v62, %v2029_v45  ;;  %v3721_v62 = vld [vmem:[#allocation20 + $0xac] sm:$0xf] }
 0x799   : > { %v2036_v27 = vmul.f32 %v5362_v24, %v5362_v24 }
 0x79b   : > { %2038 = vadd.xlane.f32.xlu0 %v2036_v27 }
 0x79c   : > { %v2030_v51 = vpop.f32.mrf.mxu1 }
 0x79d   : > { %v2031_v52 = vadd.f32 %v2030_v51, %v2016_v38  ;;  %v3593_v38 = vor.u32 %v3721_v62, %v3590_v13  ;;  %v3706_v62 = vld [vmem:[#allocation20 + $0x34] sm:$0xf] }
 0x79f   : > { %v5367_v48 = vadd.f32 %v4087_v30, %v2031_v52  ;;  %2845 = vmatpush.bf16.xpose.msrb.mxu1 %v3593_v38  ;;  %v3718_v30 = vld [vmem:[#allocation20 + $0x94] sm:$0xf]  ;;  %v3524_v38 = vld [vmem:[#allocation20 + $0x20] sm:$0xf] }
 0x7a1   : > { %v2037_v32 = vmul.f32 %v5367_v48, %v5367_v48 }
 0x7a3   : > { %2040 = vadd.xlane.f32.xlu1 %v2037_v32  ;;  %v3578_v32 = vld [vmem:[#allocation20 + $0x9c] sm:$0xf0] }
 0x7a4   : > { %v3581_v21 = vor.u32 %v3718_v30, %v3578_v32 }
 0x7a7   : > { %2846 = vmatpush.bf16.xpose.msrb.mxu1 %v3581_v21  ;;  %v3704_v21 = vld [vmem:[#allocation20 + $0x20] sm:$0xf0] }
 0x7af   : > { %2847 = vmatpush.bf16.xpose.msrb.mxu1 %v3569_v10 }
 0x80e   : > { %v2039_v17 = vpop.xlane.xlu0 %2038 }
 0x80f   : > { %v2042_v18 = vmul.f32 %v2039_v17, %v4859_v42  ;;  %v3712_v17 = vld [vmem:[#allocation20 + $0x64] sm:$0xf] }
 0x811   : > { %v2044_v22 = vadd.f32 1.1920929e-07, %v2042_v18  ;;  %v3553_v18 = vor.u32 %v3713_v16, %v3552_v60  ;;  %v3701_v16 = vld [vmem:[#allocation20 + $0x8] sm:$0xf0] }
 0x813   : > { %4058 = vrsqrt.f32 %v2044_v22  ;;  %vm2052_vm8 = vweird.f32 %v2044_v22 }
 0x816   : > { %v2041_v43 = vpop.xlane.xlu1 %2040 }
 0x817   : > { %v2043_v36 = vmul.f32 %v2041_v43, %v4859_v42  ;;  %v3722_v42 = vld [vmem:[#allocation20 + $0xb0] sm:$0xf0]  ;;  %v3711_v43 = vld [vmem:[#allocation20 + $0x58] sm:$0xf0] }
 0x818   : > { %v3589_v27 = vor.u32 %v3722_v42, %v3588_v29  ;;  %v3707_v29 = vld [vmem:[#allocation20 + $0x38] sm:$0xf0] }
 0x819   : > { %v4059_v41 = vpop.eup %4058  ;;  %v2045_v34 = vadd.f32 1.1920929e-07, %v2043_v36  ;;  %v3549_v36 = vor.u32 %v3711_v43, %v3548_v63 }
 0x81a   : > { %v2047_v25 = vmul.f32 %v4059_v41, %v2044_v22  ;;  %vm2053_vm7 = vweird.f32 %v4059_v41  ;;  %2831 = vmatpush.bf16.xpose.msrb.mxu0 %v3589_v27  ;;  %v3554_v22 = vld [vmem:[#allocation20 + $0x6c] sm:$0xf0]  ;;  %v3530_v27 = vld [vmem:[#allocation20 + $0x3c] sm:$0xf0] }
 0x81b   : > { %4060 = vrsqrt.f32 %v2045_v34  ;;  %vm2054_vm10 = vmor %vm2052_vm8, %vm2053_vm7  ;;  %vm2062_vm3 = vweird.f32 %v2045_v34  ;;  %v3557_v2 = vor.u32 %v3712_v17, %v3554_v22  ;;  %v3700_v17 = vld [vmem:[#allocation20 + $0x4] sm:$0xf] }
 0x81c   : > { %v2048_v6 = vmul.f32 %v4059_v41, %v2047_v25  ;;  %v3709_v25 = vld [vmem:[#allocation20 + $0x4c] sm:$0xf] }
 0x81d   : > { %2848 = vmatpush.bf16.xpose.msrb.mxu1 %v3557_v2 }
 0x81e   : > { %v2049_v0 = vmul.f32 0.5, %v2048_v6  ;;  %v3545_v6 = vor.u32 %v3709_v25, %v3542_v19 }
 0x820   : > { %v2050_v26 = vsub.f32 1.5, %v2049_v0  ;;  %v3536_v0 = vld [vmem:[#allocation20 + $0x38] sm:$0xf] }
 0x821   : > { %v4061_v35 = vpop.eup %4060 }
 0x822   : > { %v2057_v54 = vmul.f32 %v4061_v35, %v2045_v34  ;;  %v2051_v45 = vmul.f32 %v4059_v41, %v2050_v26  ;;  %vm2063_vm13 = vweird.f32 %v4061_v35  ;;  %2832 = vmatpush.bf16.xpose.msrb.mxu0 %v3577_v61  ;;  %v3710_v34 = vld [vmem:[#allocation20 + $0x50] sm:$0xf0]  ;;  %v3708_v26 = vld [vmem:[#allocation20 + $0x40] sm:$0xf0] }
 0x823   : > { %vm2064_vm4 = vmor %vm2062_vm3, %vm2063_vm13 }
 0x824   : > { %v2058_v44 = vmul.f32 %v4061_v35, %v2057_v54  ;;  %v2055_v51 = vsel %vm2054_vm10, %v4059_v41, %v2051_v45  ;;  %v3540_v41 = vld [vmem:[#allocation20 + $0x48] sm:$0xf] }
 0x825   : > { %v2066_v39 = vmul.f32 %v2055_v51, %v5362_v24  ;;  %v3541_v28 = vor.u32 %v3710_v34, %v3540_v41  ;;  %2849 = vmatpush.bf16.xpose.msrb.mxu1 %v3545_v6  ;;  %v3705_v51 = vld [vmem:[#allocation20 + $0x28] sm:$0xf0] }
 0x826   : > { %v2059_v1 = vmul.f32 0.5, %v2058_v44  ;;  %v3528_v44 = vld [vmem:[#allocation20 + $0x30] sm:$0xf] }
 0x827   : > { %v2071_v20 = vmul.f32 %v3987_v53, %v2066_v39  ;;  %v3529_v42 = vor.u32 %v3707_v29, %v3528_v44 }
 0x828   : > { %v2060_v52 = vsub.f32 1.5, %v2059_v1  ;;  %v3533_v1 = vor.u32 %v3706_v62, %v3530_v27 }
 0x82a   : > { %v2061_v37 = vmul.f32 %v4061_v35, %v2060_v52  ;;  %2833 = vmatpush.bf16.xpose.msrb.mxu0 %v3565_v49  ;;  %v3525_v52 = vor.u32 %v3705_v51, %v3524_v38 }
 0x82c   : > { %v2065_v23 = vsel %vm2064_vm4, %v4061_v35, %v2061_v37  ;;  %v3537_v35 = vor.u32 %v3708_v26, %v3536_v0 }
 0x82d   : > { %v2067_v56 = vmul.f32 %v2065_v23, %v5367_v48  ;;  %2850 = vmatpush.bf16.xpose.msrb.mxu1 %v3533_v1  ;;  %v3516_v23 = vld [vmem:[#allocation20 + $0x18] sm:$0xf] }
 0x82f   : > { %v2072_v31 = vmul.f32 %v3987_v53, %v2067_v56  ;;  %v3517_v56 = vor.u32 %v3704_v21, %v3516_v23 }
 0x831   : > { %v2073_v47 = vpack.c.bf16 %v2072_v31, %v2071_v20 }
 0x832   : > { %2834 = vmatpush.bf16.xpose.msrb.mxu0 %v3553_v18  ;;  %v3506_v18 = vld [vmem:[#allocation20 + $0xc] sm:$0xf0] }
 0x833   : > { %2274 = vmatmul.bf16.vlgmr.msrb.gmra.mxu2 %v2073_v47  ;;  %2288 = vmatmul.bf16.vlgmr.msrb.gmra.mxu3 %v2073_v47 }
 0x834   : > { %2302 = vmatmul.bf16.vlgmr.msra.gmra.mxu0 %v2073_v47  ;;  %2508 = vmatmul.bf16.vlgmr.msra.gmra.mxu1 %v2073_v47 }
 0x835   : > { %2859 = vmatpush.bf16.xpose.msrb.mxu2 %v3597_v55  ;;  %v3512_v55 = vld [vmem:[#allocation20 + $0x8] sm:$0xf] }
 0x83a   : > { %2835 = vmatpush.bf16.xpose.msrb.mxu0 %v3541_v28 }
 0x83d   : > { %2860 = vmatpush.bf16.xpose.msrb.mxu2 %v3585_v7  ;;  %v3513_v7 = vor.u32 %v3702_v4, %v3512_v55 }
 0x842   : > { %2836 = vmatpush.bf16.xpose.msrb.mxu0 %v3529_v42 }
 0x843   : > { %2522 = vmatmul.bf16.vlgmr.msra.gmra.mxu2 %v2073_v47  ;;  %2536 = vmatmul.bf16.vlgmr.msra.gmra.mxu3 %v2073_v47  ;;  %v3521_v47 = vor.u32 %v3703_v58, %v3518_v57 }
 0x845   : > { %2861 = vmatpush.bf16.xpose.msrb.mxu2 %v3573_v5  ;;  %2851 = vmatpush.bf16.xpose.msrb.mxu1 %v3521_v47 }
 0x84a   : > { %2837 = vmatpush.bf16.xpose.msrb.mxu0 %v3517_v56 }
 0x84d   : > { %2862 = vmatpush.bf16.xpose.msrb.mxu2 %v3561_v15  ;;  %v3504_v15 = vld [vmem:[#allocation20] sm:$0xf] }
 0x84e   : > { %v3505_v43 = vor.u32 %v3701_v16, %v3504_v15 }
 0x852   : > { %2838 = vmatpush.bf16.xpose.msrb.mxu0 %v3505_v43 }
 0x855   : > { %2863 = vmatpush.bf16.xpose.msrb.mxu2 %v3549_v36  ;;  %v3509_v36 = vor.u32 %v3700_v17, %v3506_v18 }
 0x857   : > { %2852 = vmatpush.bf16.xpose.msrb.mxu1 %v3509_v36 }
 0x85d   : > { %2864 = vmatpush.bf16.xpose.msrb.mxu2 %v3537_v35 }
 0x865   : > { %2865 = vmatpush.bf16.xpose.msrb.mxu2 %v3525_v52 }
 0x86d   : > { %2866 = vmatpush.bf16.xpose.msrb.mxu2 %v3513_v7 }
 0x8b1   : > { %v5378_v54 = vpop.f32.mrf.mxu0 }
 0x8b2   : > { %v2544_v45 = vsub.f32 0.0, %v5378_v54 }
 0x8b4   : > { %v2552_v13 = vmul.f32 1.442695, %v2544_v45 }
 0x8b6   : > { %4062 = vpow2.f32 %v2552_v13  ;;  %v5381_v50 = vpop.f32.mrf.mxu2  ;;  %v5383_v46 = vpop.f32.mrf.mxu3 }
 0x8b7   : > { %v2542_v30 = vsub.f32 0.0, %v5381_v50  ;;  %v2543_v32 = vsub.f32 0.0, %v5383_v46 }
 0x8b9   : > { %v2548_v37 = vmul.f32 1.442695, %v2542_v30  ;;  %v2550_v53 = vmul.f32 1.442695, %v2543_v32  ;;  %v5387_v39 = vpop.f32.mrf.mxu0 }
 0x8ba   : > { %v2547_v61 = vsub.f32 0.0, %v5387_v39 }
 0x8bb   : > { %4064 = vpow2.f32 %v2548_v37 }
 0x8bc   : > { %v4063_v20 = vpop.eup %4062  ;;  %4066 = vpow2.f32 %v2550_v53  ;;  %v2558_v31 = vmul.f32 1.442695, %v2547_v61 }
 0x8bd   : > { %v2562_v3 = vadd.f32 1.0, %v4063_v20 }
 0x8be   : > { %4068 = vpow2.f32 %v2558_v31  ;;  %v5390_v8 = vpop.f32.mrf.mxu2  ;;  %v5392_v9 = vpop.f32.mrf.mxu3 }
 0x8bf   : > { %4070 = vrcp.f32 %v2562_v3  ;;  %v2545_v5 = vsub.f32 0.0, %v5390_v8  ;;  %v2546_v33 = vsub.f32 0.0, %v5392_v9  ;;  %v2605_v0 = vand.u32 2147483647, %v2562_v3 }
 0x8c0   : > { %v2607_v26 = vand.u32 2147483648, %v2562_v3  ;;  %vm2601_vm6 = vweird.f32 %v2562_v3 }
 0x8c1   : > { %v4065_v11 = vpop.eup %4064  ;;  %v2554_v10 = vmul.f32 1.442695, %v2545_v5  ;;  %v2556_v40 = vmul.f32 1.442695, %v2546_v33  ;;  %vm5422_vm11 = vcmp.eq.f32.partialorder %v2605_v0, 8.507059e+37 }
 0x8c2   : > { %v4067_v12 = vpop.eup %4066  ;;  %v5396_v49 = vadd.f32 1.0, %v4065_v11  ;;  %v2608_v51 = vor.u32 1.1754944e-38, %v2607_v26 }
 0x8c3   : > { %v5398_v59 = vadd.f32 1.0, %v4067_v12 }
 0x8c4   : > { %v4069_v14 = vpop.eup %4068  ;;  %4072 = vrcp.f32 %v5396_v49  ;;  %v2575_v52 = vand.u32 2147483647, %v5396_v49  ;;  %vm2571_vm12 = vweird.f32 %v5396_v49  ;;  %v2577_v61 = vand.u32 2147483648, %v5396_v49 }
 0x8c5   : > { %v4071_v60 = vpop.eup %4070  ;;  %4074 = vrcp.f32 %v5398_v59  ;;  %v5402_v2 = vadd.f32 1.0, %v4069_v14  ;;  %vm2586_vm14 = vweird.f32 %v5398_v59  ;;  %v2590_v31 = vand.u32 2147483647, %v5398_v59 }
 0x8c6   : > { %v2597_v22 = vmul.f32 %v4071_v60, %v2562_v3  ;;  %4076 = vpow2.f32 %v2554_v10  ;;  %vm2602_vm5 = vweird.f32 %v4071_v60  ;;  %v2537_v30 = vpop.f32.mrf.mxu3  ;;  %vm5440_vm0 = vcmp.eq.f32.partialorder %v2575_v52, 8.507059e+37  ;;  %v2523_v43 = vpop.f32.mrf.mxu2 }
 0x8c7   : > { %4078 = vpow2.f32 %v2556_v40  ;;  %vm5418_vm9 = vmor %vm2601_vm6, %vm2602_vm5  ;;  %v2652_v21 = vand.u32 2147483648, %v5402_v2  ;;  %v2650_v58 = vand.u32 2147483647, %v5402_v2  ;;  %v2592_v47 = vand.u32 2147483648, %v5398_v59  ;;  %v2509_v40 = vpop.f32.mrf.mxu1 }
 0x8c8   : > { %v2598_v63 = vsub.f32 1.0, %v2597_v22  ;;  %4080 = vrcp.f32 %v5402_v2  ;;  %vm2646_vm2 = vweird.f32 %v5402_v2  ;;  %v2578_v7 = vor.u32 1.1754944e-38, %v2577_v61 }
 0x8c9   : > { %v2653_v33 = vor.u32 1.1754944e-38, %v2652_v21  ;;  %vm2651_vm10 = vcmp.eq.f32.partialorder %v2650_v58, 8.507059e+37  ;;  %vm5461_vm3 = vcmp.eq.f32.partialorder %v2590_v31, 8.507059e+37  ;;  %v2593_v16 = vor.u32 1.1754944e-38, %v2592_v47 }
 0x8ca   : > { %v5405_v41 = vpop.eup %4072  ;;  %v2599_v34 = vmul.f32 %v4071_v60, %v2598_v63 }
 0x8cb   : > { %v5407_v25 = vpop.eup %4074  ;;  %v2567_v28 = vmul.f32 %v5405_v41, %v5396_v49  ;;  %vm2572_vm1 = vweird.f32 %v5405_v41 }
 0x8cc   : > { %v2582_v19 = vmul.f32 %v5407_v25, %v5398_v59  ;;  %v4077_v6 = vpop.eup %4076  ;;  %v2600_v45 = vadd.f32 %v4071_v60, %v2599_v34  ;;  %vm2587_vm7 = vweird.f32 %v5407_v25  ;;  %vm5457_vm13 = vmor %vm2571_vm12, %vm2572_vm1 }
 0x8cd   : > { %v4079_v35 = vpop.eup %4078  ;;  %v2568_v44 = vsub.f32 1.0, %v2567_v28  ;;  %v5413_v29 = vadd.f32 1.0, %v4077_v6  ;;  %vm5473_vm4 = vmor %vm2586_vm14, %vm2587_vm7 }
 0x8ce   : > { %v4081_v42 = vpop.eup %4080  ;;  %v2583_v62 = vsub.f32 1.0, %v2582_v19  ;;  %v5415_v27 = vadd.f32 1.0, %v4079_v35  ;;  %v2604_v32 = vsel %vm5418_vm9, %v4071_v60, %v2600_v45  ;;  %v2539_v59 = vpop.f32.mrf.mxu3 }
 0x8cf   : > { %v2642_v13 = vmul.f32 %v4081_v42, %v5402_v2  ;;  %4082 = vrcp.f32 %v5413_v29  ;;  %v2569_v37 = vmul.f32 %v5405_v41, %v2568_v44  ;;  %vm2647_vm15 = vweird.f32 %v4081_v42  ;;  %v2525_v61 = vpop.f32.mrf.mxu2 }
 0x8d0   : > { %4084 = vrcp.f32 %v5415_v27  ;;  %v2584_v23 = vmul.f32 %v5407_v25, %v2583_v62  ;;  %v2609_v57 = vsel %vm5422_vm11, %v2608_v51, %v2604_v32  ;;  %vm2648_vm8 = vmor %vm2646_vm2, %vm2647_vm15  ;;  %v2620_v63 = vand.u32 2147483647, %v5413_v29 }
 0x8d1   : > { %v2643_v53 = vsub.f32 1.0, %v2642_v13  ;;  %v2570_v55 = vadd.f32 %v5405_v41, %v2569_v37  ;;  %v2658_v12 = vmul.f32 %v2609_v57, %v5378_v54  ;;  %v2637_v28 = vand.u32 2147483648, %v5415_v27  ;;  %v2511_v37 = vpop.f32.mrf.mxu1 }
 0x8d2   : > { %v2585_v5 = vadd.f32 %v5407_v25, %v2584_v23  ;;  %v2635_v35 = vand.u32 2147483647, %v5415_v27  ;;  %vm2616_vm9 = vweird.f32 %v5413_v29  ;;  %vm2631_vm12 = vweird.f32 %v5415_v27 }
 0x8d3   : > { %v2644_v56 = vmul.f32 %v4081_v42, %v2643_v53  ;;  %v2574_v18 = vsel %vm5457_vm13, %v5405_v41, %v2570_v55  ;;  %v2622_v41 = vand.u32 2147483648, %v5413_v29  ;;  %v2664_v6 = vmul.f32 %v2658_v12, %v2537_v30 }
 0x8d4   : > { %v2589_v36 = vsel %vm5473_vm4, %v5407_v25, %v2585_v5  ;;  %vm2621_vm14 = vcmp.eq.f32.partialorder %v2620_v63, 8.507059e+37  ;;  %v2638_v38 = vor.u32 1.1754944e-38, %v2637_v28 }
 0x8d5   : > { %v2645_v4 = vadd.f32 %v4081_v42, %v2644_v56  ;;  %v4083_v3 = vpop.eup %4082  ;;  %v2594_v25 = vsel %vm5461_vm3, %v2593_v16, %v2589_v36 }
 0x8d6   : > { %v4085_v11 = vpop.eup %4084  ;;  %v2612_v14 = vmul.f32 %v4083_v3, %v5413_v29  ;;  %vm2617_vm5 = vweird.f32 %v4083_v3  ;;  %v2657_v51 = vmul.f32 %v2594_v25, %v5383_v46 }
 0x8d7   : > { %v2649_v10 = vsel %vm2648_vm8, %v4081_v42, %v2645_v4  ;;  %v2627_v54 = vmul.f32 %v4085_v11, %v5415_v27  ;;  %vm2632_vm6 = vweird.f32 %v4085_v11  ;;  %vm2618_vm11 = vmor %vm2616_vm9, %vm2617_vm5  ;;  %v2623_v42 = vor.u32 1.1754944e-38, %v2622_v41 }
 0x8d8   : > { %v2654_v17 = vsel %vm2651_vm10, %v2653_v33, %v2649_v10  ;;  %v2613_v2 = vsub.f32 1.0, %v2612_v14  ;;  %vm2633_vm15 = vmor %vm2631_vm12, %vm2632_vm6  ;;  %v2663_v23 = vmul.f32 %v2657_v51, %v2523_v43 }
 0x8d9   : > { %v2661_v22 = vmul.f32 %v2654_v17, %v5387_v39  ;;  %v2628_v34 = vsub.f32 1.0, %v2627_v54  ;;  %v2579_v39 = vsel %vm5440_vm0, %v2578_v7, %v2574_v18  ;;  %vm2636_vm0 = vcmp.eq.f32.partialorder %v2635_v35, 8.507059e+37 }
 0x8da   : > { %v2614_v19 = vmul.f32 %v4083_v3, %v2613_v2  ;;  %v2656_v13 = vmul.f32 %v2579_v39, %v5381_v50 }
 0x8db   : > { %v2667_v0 = vmul.f32 %v2661_v22, %v2539_v59  ;;  %v2629_v26 = vmul.f32 %v4085_v11, %v2628_v34 }
 0x8dc   : > { %v2615_v45 = vadd.f32 %v4083_v3, %v2614_v19  ;;  %v2662_v27 = vmul.f32 %v2656_v13, %v2509_v40 }
 0x8dd   : > { %v2670_v44 = vpack.c.bf16 %v2667_v0, %v2664_v6  ;;  %v2630_v62 = vadd.f32 %v4085_v11, %v2629_v26 }
 0x8de   : > { %v2619_v1 = vsel %vm2618_vm11, %v4083_v3, %v2615_v45 }
 0x8df   : > { %2867 = vmatmul.bf16.vlgmr.msrb.gmra.mxu2 %v2670_v44  ;;  %v2624_v52 = vsel %vm2621_vm14, %v2623_v42, %v2619_v1  ;;  %v2634_v30 = vsel %vm2633_vm15, %v4085_v11, %v2630_v62 }
 0x8e0   : > { %v2659_v29 = vmul.f32 %v2624_v52, %v5390_v8  ;;  %v2639_v32 = vsel %vm2636_vm0, %v2638_v38, %v2634_v30 }
 0x8e1   : > { %v2660_v53 = vmul.f32 %v2639_v32, %v5392_v9 }
 0x8e2   : > { %v2665_v50 = vmul.f32 %v2659_v29, %v2511_v37 }
 0x8e3   : > { %v2666_v21 = vmul.f32 %v2660_v53, %v2525_v61 }
 0x8e4   : > { %v2668_v56 = vpack.c.bf16 %v2665_v50, %v2662_v27 }
 0x8e5   : > { %v2669_v58 = vpack.c.bf16 %v2666_v21, %v2663_v23 }
 0x8e6   : > { %2839 = vmatmul.bf16.vlgmr.msrb.gmra.mxu0 %v2668_v56 }
 0x8e7   : > { %2853 = vmatmul.bf16.vlgmr.msrb.gmra.mxu1 %v2669_v58 }
 0x962   : > { %v2868_v20 = vpop.f32.mrf.mxu2 }
 0x963   : > { %v2840_v46 = vpop.f32.mrf.mxu0 }
 0x964   : > { %v2854_v57 = vpop.f32.mrf.mxu1 }
 0x965   : > { %v2855_v31 = vadd.f32 %v2854_v57, %v2840_v46 }
 0x967   : > { %v2869_v8 = vadd.f32 %v2868_v20, %v2855_v31 }
 0x969   : > { %v2873_v47 = vadd.f32 %v2869_v8, %v5362_v24 }
 0x96a   : > { %v2870_v3 = vpop.f32.mrf.mxu2 }
 0x96b   : > { %2875 = vst [vmem:[%s640_s1] sm:$0xff] %v2873_v47  ;;  %v2842_v9 = vpop.f32.mrf.mxu0 }
 0x96c   : > { %v2856_v55 = vpop.f32.mrf.mxu1 }
 0x96d   : > { %v2857_v4 = vadd.f32 %v2856_v55, %v2842_v9 }
 0x96f   : > { %v2871_v7 = vadd.f32 %v2870_v3, %v2857_v4 }
 0x971   : > { %v2874_v5 = vadd.f32 %v2871_v7, %v5367_v48 }
 0x973   : > { %2876 = vst [vmem:[%s640_s1 + $0x8] sm:$0xff] %v2874_v5 }
 0x974   : > { %4475 = shalt.err (!%p4472_p9)
}
 0x975   : > { %s4564_s24 = smov 128   ;;  %s4565_s1 = smov 8  }
 0x976   : > { %3785 = dma.vmem_to_hbm [thread:$0]  (%p4779_p13), %s2891_s3, 256, %s2893_s16, %s2878_s15, %s4564_s24, %s4564_s24, %s4565_s1  }
 0x977 PF: > { %s2907_s13 = sand.u32 1, %s4526_s25   ;;  %p5593_p10 = scmp.ge.s32.totalorder %s4538_s28, 2 }
 0x978   : > { %s2908_s30 = scalar_lea.sflag [#allocation4], %s2907_s13 }
 0x979   : > { %p3826_p11 = pnand %p5593_p10, %p4784_p5 }
 0x97b   : > { %p3827_p0 = pneg %p3826_p11 }
 0x97d   : > { %4521 = dma.done.wait (%p3827_p0), %s2908_s30, 256  }
 0x97e   : > { %4523 = vsyncadd (%p3827_p0), %s2908_s30, 4294967040  ;;  %p32_p2 = scmp.ge.s32.totalorder %s4759_s14, 4   ;;  %s5594_s25 = smov %s4530_s26 }
 0x97f   : > { %s5595_s26 = smov %s4534_s27  ;;  %s5596_s27 = smov %s4771_s19 }
 0x980   : > { %s5597_s28 = smov %s4759_s14  ;;  %34 = sbr.rel (!%p32_p2) target bundleno = 19 (0x13), region = 161 }
 0x985   :  { %2914 = vsyncpa [#allocation3], 1 }
 0x986   :  { %2916 = vsyncpa [#allocation3 + $0x1], 1 }
 0x987   :  { %2917 = vsyncpa [#allocation6], 1 }
 0x988   :  { %2918 = vsyncpa [#allocation9], 1 }
 0x989   :  { %2919 = vsyncpa [#allocation12], 1 }
 0x98a   :  { %2920 = vsyncpa [#allocation15], 1 }
 0x98b   :  { %2921 = vsyncpa [#allocation18], 1 }
 0x98c   :  { %2922 = vsyncpa [#allocation21], 1 }
 0x98d   :  { %2923 = vsyncpa [#allocation4], 1 }
 0x98e   :  { %2925 = vsyncpa [#allocation4 + $0x1], 1 }

</bundles_post_ra>
